<compile_context>
chip_gen: v7x
topology: tpu7x:2x2x1
jax: 0.10.0
libtpu: 0.0.40
codegen_flags: <defaults>
</compile_context>

<pallas_src>
import functools

import jax
import jax.numpy as jnp
import numpy as np
from jax import lax
from jax.experimental import pallas as pl
from jax.experimental.pallas import tpu as pltpu

_EPS = 1e-5
_LEAKY = 0.2
_VMEM = pltpu.MemorySpace.VMEM


# ------------------------------ fused kernel ------------------------------- #

def _bn_normalize(x, p, count):
    """Training-mode BatchNorm normalisation (no affine) for (rows, W*C) data.

    `p` = kron(ones(W, W), eye(C)) so `x @ p` sums the lane groups sharing a
    channel and broadcasts the sum back to every group; combined with the row
    reduction this gives per-channel batch stats with one dense matmul and one
    sublane reduce (no per-channel lane slicing).  Two-pass, biased variance.
    """
    inv_count = 1.0 / count
    mean_t = jnp.sum(jnp.dot(x, p, preferred_element_type=jnp.float32),
                     axis=0, keepdims=True) * inv_count
    d = x - mean_t
    var_t = jnp.sum(jnp.dot(d * d, p, preferred_element_type=jnp.float32),
                    axis=0, keepdims=True) * inv_count
    return d * lax.rsqrt(var_t + _EPS)


def _generator_kernel(
    z_ref, wlin_ref, blin_ref,          # linear
    bnp1_ref, g1t_ref, b1t_ref,         # BatchNorm2d(c1)
    m1_ref, cb1t_ref,                   # Conv2d(c1,c2,3,p=1): banded, x-upsample folded
    bnp2_ref, g2t_ref, b2t_ref,         # BatchNorm2d(c2)
    m2_ref, cb2t_ref,                   # Conv2d(c2,3,3,p=1): banded, channels padded
    bnp3_ref,                           # BatchNorm2d(3, affine=False)
    o_ref,                              # (B*h2, h2*c3p) lane-dense output
    p1_scr, p2_scr,                     # y-upsampled + y-padded row buffers
    *, init_size,
):
    s = init_size
    ss, h1, h2 = s * s, 2 * s, 4 * s
    B = z_ref.shape[0]
    c1 = g1t_ref.shape[1] // ss
    c2 = g2t_ref.shape[1] // h1

    # ---- Linear: one MXU matmul, columns ordered (y, x, c1) ----------------
    h = jnp.dot(z_ref[...], wlin_ref[...],
                preferred_element_type=jnp.float32) + blin_ref[...]

    # ---- BatchNorm2d(c1): dense selector-matmul stats + affine -------------
    hn = _bn_normalize(h, bnp1_ref[...], float(B * ss)) * g1t_ref[...] + b1t_ref[...]

    # ---- Upsample x2 (y) + 1-row zero pad into p1_scr ----------------------
    # x-direction upsample and x zero-pad are folded into m1 on the host.
    zrow1 = jnp.zeros((B, s * c1), jnp.float32)
    p1_scr[:, 0, :] = zrow1                    # borders only; interior overwritten
    p1_scr[:, h1 + 1, :] = zrow1
    for y in range(s):                          # s contiguous (B,2,s*c1) block stores
        row = hn[:, y * s * c1:(y + 1) * s * c1]
        p1_scr[:, 1 + 2 * y:3 + 2 * y, :] = jnp.broadcast_to(
            row[:, None, :], (B, 2, s * c1))

    # ---- Conv2d(c1,c2,3,p=1): 3 banded matmuls (one per ky tap) ------------
    a1 = jnp.dot(p1_scr[:, 0:h1, :].reshape(B * h1, s * c1), m1_ref[0],
                 preferred_element_type=jnp.float32)
    for ky in (1, 2):
        a1 = a1 + jnp.dot(p1_scr[:, ky:ky + h1, :].reshape(B * h1, s * c1),
                          m1_ref[ky], preferred_element_type=jnp.float32)
    a1 = a1 + cb1t_ref[...]

    # ---- BatchNorm2d(c2) + LeakyReLU(0.2) -----------------------------------
    a1 = _bn_normalize(a1, bnp2_ref[...], float(B * h1 * h1)) * g2t_ref[...] + b2t_ref[...]
    a1 = jnp.where(a1 >= 0, a1, _LEAKY * a1)

    # ---- Upsample x2 (y) + 1-row zero pad into p2_scr ----------------------
    a1_3d = a1.reshape(B, h1, h1 * c2)
    zrow2 = jnp.zeros((B, h1 * c2), jnp.float32)
    p2_scr[:, 0, :] = zrow2
    p2_scr[:, h2 + 1, :] = zrow2
    for y in range(h1):                         # h1 contiguous block stores
        p2_scr[:, 1 + 2 * y:3 + 2 * y, :] = jnp.broadcast_to(
            a1_3d[:, y:y + 1, :], (B, 2, h1 * c2))

    # ---- Conv2d(c2,3,3,p=1): 3 banded matmuls, lane-dense padded output ----
    a2 = jnp.dot(p2_scr[:, 0:h2, :].reshape(B * h2, h1 * c2), m2_ref[0],
                 preferred_element_type=jnp.float32)
    for ky in (1, 2):
        a2 = a2 + jnp.dot(p2_scr[:, ky:ky + h2, :].reshape(B * h2, h1 * c2),
                          m2_ref[ky], preferred_element_type=jnp.float32)
    a2 = jnp.tanh(a2 + cb2t_ref[...])

    # ---- BatchNorm2d(3, affine=False); padded channels stay exactly 0 ------
    o_ref[...] = _bn_normalize(a2, bnp3_ref[...], float(B * h2 * h2))


# ------------------------------ host wrappers ------------------------------ #

def prepare_params(tp, init_size):
    """Repack PyTorch-layout parameters into the kernel layouts (one-time)."""
    s = init_size
    ss, h1, h2 = s * s, 2 * s, 4 * s
    lw = np.asarray(tp["lin_w"], np.float32)          # (c1*s*s, D), rows (c, y, x)
    lb = np.asarray(tp["lin_b"], np.float32)
    D = lw.shape[1]
    c1 = int(tp["bn1_g"].shape[0])
    c2 = int(tp["bn2_g"].shape[0])
    c3 = int(tp["conv2_w"].shape[0])                   # 3 image channels
    c3p = 8                                            # pad so h2*c3p is lane dense

    # Linear: rows (c, y, x) -> columns (y, x, c), transposed to (D, ss*c1).
    wlin = lw.reshape(c1, s, s, D).transpose(1, 2, 0, 3).reshape(ss * c1, D).T
    blin = lb.reshape(c1, s, s).transpose(1, 2, 0).reshape(1, ss * c1)

    # BN selector matrices: kron(ones(W,W), eye(C))  (1/count applied in-kernel).
    bnp1 = np.kron(np.ones((ss, ss), np.float32), np.eye(c1, dtype=np.float32))
    bnp2 = np.kron(np.ones((h1, h1), np.float32), np.eye(c2, dtype=np.float32))
    bnp3 = np.kron(np.ones((h2, h2), np.float32), np.eye(c3p, dtype=np.float32))

    g1t = np.tile(np.asarray(tp["bn1_g"], np.float32).reshape(1, c1), (1, ss))
    b1t = np.tile(np.asarray(tp["bn1_b"], np.float32).reshape(1, c1), (1, ss))
    g2t = np.tile(np.asarray(tp["bn2_g"], np.float32).reshape(1, c2), (1, h1))
    b2t = np.tile(np.asarray(tp["bn2_b"], np.float32).reshape(1, c2), (1, h1))

    # Conv weights as banded matrices that fold the 2x nearest x-upsample and
    # the 1-pixel x zero-padding:
    #   m[ky][xin*cin+ci, xout*cout_alloc+co] =
    #     sum_{kx : 0 <= xout+kx-1 < w_out, (xout+kx-1)//2 == xin} w[co,ci,ky,kx]
    def banded(w, cin, cout_alloc, w_out):
        cout = w.shape[0]
        m = np.zeros((3, (w_out // 2) * cin, w_out * cout_alloc), np.float32)
        for ky in range(3):
            for kx in range(3):
                for xo in range(w_out):
                    xu = xo + kx - 1
                    if 0 <= xu < w_out:
                        xi = xu // 2
                        m[ky, xi * cin:(xi + 1) * cin,
                          xo * cout_alloc:xo * cout_alloc + cout] += w[:, :, ky, kx].T
        return m

    m1 = banded(np.asarray(tp["conv1_w"], np.float32), c1, c2, h1)
    m2 = banded(np.asarray(tp["conv2_w"], np.float32), c2, c3p, h2)
    cb1t = np.tile(np.asarray(tp["conv1_b"], np.float32).reshape(1, c2), (1, h1))
    cb2 = np.zeros((c3p,), np.float32)
    cb2[:c3] = np.asarray(tp["conv2_b"], np.float32)
    cb2t = np.tile(cb2.reshape(1, c3p), (1, h2))

    host = dict(wlin=wlin, blin=blin, bnp1=bnp1, g1t=g1t, b1t=b1t,
                m1=m1, cb1t=cb1t, bnp2=bnp2, g2t=g2t, b2t=b2t,
                m2=m2, cb2t=cb2t, bnp3=bnp3)
    return {k: jnp.asarray(v) for k, v in host.items()}


def generator_forward(z, kp, init_size):
    B = z.shape[0]
    s = init_size
    ss, h1, h2 = s * s, 2 * s, 4 * s
    c1 = kp["g1t"].shape[1] // ss
    c2 = kp["g2t"].shape[1] // h1
    c3p = kp["cb2t"].shape[1] // h2
    vspec = pl.BlockSpec(memory_space=_VMEM)
    out2d = pl.pallas_call(
        functools.partial(_generator_kernel, init_size=s),
        out_shape=jax.ShapeDtypeStruct((B * h2, h2 * c3p), jnp.float32),
        in_specs=[vspec] * 14,
        out_specs=vspec,
        scratch_shapes=[
            pltpu.VMEM((B, h1 + 2, s * c1), jnp.float32),   # y-up/pad for conv1
            pltpu.VMEM((B, h2 + 2, h1 * c2), jnp.float32),  # y-up/pad for conv2
        ],
    )(z, kp["wlin"], kp["blin"], kp["bnp1"], kp["g1t"], kp["b1t"],
      kp["m1"], kp["cb1t"], kp["bnp2"], kp["g2t"], kp["b2t"],
      kp["m2"], kp["cb2t"], kp["bnp3"])
    # (B*H, W*c3p) -> NCHW; drop the zero-padded channels (tiny wrapper glue).
    img = out2d.reshape(B, h2, h2, c3p)[..., :3]
    return jnp.transpose(img, (0, 3, 1, 2))


# ------------------------------ pure-JAX reference ------------------------- #

def _bn_train_nchw(x, gamma, beta):
    mean = jnp.mean(x, axis=(0, 2, 3), keepdims=True)
    var = jnp.mean((x - mean) ** 2, axis=(0, 2, 3), keepdims=True)
    y = (x - mean) * lax.rsqrt(var + _EPS)
    if gamma is not None:
        y = y * gamma.reshape(1, -1, 1, 1) + beta.reshape(1, -1, 1, 1)
    return y


def reference_forward(z, tp, init_size):
    s = init_size
    B = z.shape[0]
    c1 = tp["bn1_g"].shape[0]
    h = jnp.matmul(z, tp["lin_w"].T, precision=lax.Precision.HIGHEST) + tp["lin_b"]
    x = h.reshape(B, c1, s, s)
    x = _bn_train_nchw(x, tp["bn1_g"], tp["bn1_b"])
    x = jnp.repeat(jnp.repeat(x, 2, axis=2), 2, axis=3)
    x = lax.conv_general_dilated(
        x, tp["conv1_w"], (1, 1), ((1, 1), (1, 1)),
        dimension_numbers=("NCHW", "OIHW", "NCHW"),
        precision=lax.Precision.HIGHEST) + tp["conv1_b"].reshape(1, -1, 1, 1)
    x = _bn_train_nchw(x, tp["bn2_g"], tp["bn2_b"])
    x = jnp.where(x >= 0, x, _LEAKY * x)
    x = jnp.repeat(jnp.repeat(x, 2, axis=2), 2, axis=3)
    x = lax.conv_general_dilated(
        x, tp["conv2_w"], (1, 1), ((1, 1), (1, 1)),
        dimension_numbers=("NCHW", "OIHW", "NCHW"),
        precision=lax.Precision.HIGHEST) + tp["conv2_b"].reshape(1, -1, 1, 1)
    x = jnp.tanh(x)
    return _bn_train_nchw(x, None, None)


# ------------------------------------ main ---------------------------------- #

if __name__ == "__main__":
    # Small shapes consistent with the module structure.
    B, image_size, latent_dim, c1, c2 = 2, 16, 32, 16, 8
    init_size = image_size // 4
    F = c1 * init_size ** 2

    key = jax.random.PRNGKey(0)
    ks = jax.random.split(key, 11)

    # Parameters in PyTorch layouts (BN gamma/beta perturbed to exercise the
    # affine path; the final BN is affine-free by construction).
    tparams = {
        "lin_w": 0.05 * jax.random.normal(ks[0], (F, latent_dim), jnp.float32),
        "lin_b": 0.05 * jax.random.normal(ks[1], (F,), jnp.float32),
        "bn1_g": 1.0 + 0.1 * jax.random.normal(ks[2], (c1,), jnp.float32),
        "bn1_b": 0.1 * jax.random.normal(ks[3], (c1,), jnp.float32),
        "conv1_w": 0.05 * jax.random.normal(ks[4], (c2, c1, 3, 3), jnp.float32),
        "conv1_b": 0.05 * jax.random.normal(ks[5], (c2,), jnp.float32),
        "bn2_g": 1.0 + 0.1 * jax.random.normal(ks[6], (c2,), jnp.float32),
        "bn2_b": 0.1 * jax.random.normal(ks[7], (c2,), jnp.float32),
        "conv2_w": 0.05 * jax.random.normal(ks[8], (3, c2, 3, 3), jnp.float32),
        "conv2_b": 0.05 * jax.random.normal(ks[9], (3,), jnp.float32),
    }
    z = jax.random.normal(ks[10], (B, latent_dim), jnp.float32)

    kparams = prepare_params(tparams, init_size)
    out = generator_forward(z, kparams, init_size)
    out = jax.block_until_ready(out)

    assert out.shape == (B, 3, image_size, image_size), out.shape
    assert out.dtype == jnp.float32
    assert bool(jnp.all(jnp.isfinite(out)))

    ref = reference_forward(z, tparams, init_size)
    err = float(jnp.max(jnp.abs(out - ref)))
    assert err < 5e-3, f"max abs error vs reference: {err}"
    print("KERNEL_OK")
</pallas_src>

<mosaic_0001>
module attributes {stable_mosaic.version = 11 : i64} {
  func.func @_generator_kernel(%arg0: memref<2x32xf32, #tpu.memory_space<vmem>>, %arg1: memref<32x256xf32, #tpu.memory_space<vmem>>, %arg2: memref<1x256xf32, #tpu.memory_space<vmem>>, %arg3: memref<256x256xf32, #tpu.memory_space<vmem>>, %arg4: memref<1x256xf32, #tpu.memory_space<vmem>>, %arg5: memref<1x256xf32, #tpu.memory_space<vmem>>, %arg6: memref<3x64x64xf32, #tpu.memory_space<vmem>>, %arg7: memref<1x64xf32, #tpu.memory_space<vmem>>, %arg8: memref<64x64xf32, #tpu.memory_space<vmem>>, %arg9: memref<1x64xf32, #tpu.memory_space<vmem>>, %arg10: memref<1x64xf32, #tpu.memory_space<vmem>>, %arg11: memref<3x64x128xf32, #tpu.memory_space<vmem>>, %arg12: memref<1x128xf32, #tpu.memory_space<vmem>>, %arg13: memref<128x128xf32, #tpu.memory_space<vmem>>, %arg14: memref<32x128xf32, #tpu.memory_space<vmem>>, %arg15: memref<2x10x64xf32, #tpu.memory_space<vmem>>, %arg16: memref<2x18x64xf32, #tpu.memory_space<vmem>>) attributes {dimension_semantics = [], scalar_prefetch = 0 : i64, scratch_operands = 2 : i64, tpu.core_type = #tpu.core_type<tc>} {
    %c0 = arith.constant 0 : index
    %c0_0 = arith.constant 0 : index
    %0 = vector.load %arg0[%c0, %c0_0] : memref<2x32xf32, #tpu.memory_space<vmem>>, vector<2x32xf32>
    %c0_1 = arith.constant 0 : index
    %c0_2 = arith.constant 0 : index
    %1 = vector.load %arg1[%c0_1, %c0_2] : memref<32x256xf32, #tpu.memory_space<vmem>>, vector<32x256xf32>
    %cst = arith.constant dense<0.000000e+00> : vector<2x256xf32>
    %2 = tpu.matmul %0, %1, %cst {dimension_numbers = #tpu.dot_dimension_numbers<[1], [0], [0], [1], [0, 0, 1, 1], [], []>} : vector<2x32xf32>, vector<32x256xf32>, vector<2x256xf32> -> vector<2x256xf32>
    %c0_3 = arith.constant 0 : index
    %c0_4 = arith.constant 0 : index
    %3 = vector.load %arg2[%c0_3, %c0_4] : memref<1x256xf32, #tpu.memory_space<vmem>>, vector<1x256xf32>
    %4 = vector.broadcast %3 : vector<1x256xf32> to vector<2x256xf32>
    %5 = arith.addf %2, %4 : vector<2x256xf32>
    %c0_5 = arith.constant 0 : index
    %c0_6 = arith.constant 0 : index
    %6 = vector.load %arg3[%c0_5, %c0_6] : memref<256x256xf32, #tpu.memory_space<vmem>>, vector<256x256xf32>
    %cst_7 = arith.constant dense<0.000000e+00> : vector<2x256xf32>
    %7 = tpu.matmul %5, %6, %cst_7 {dimension_numbers = #tpu.dot_dimension_numbers<[1], [0], [0], [1], [0, 0, 1, 1], [], []>} : vector<2x256xf32>, vector<256x256xf32>, vector<2x256xf32> -> vector<2x256xf32>
    %cst_8 = arith.constant dense<0.000000e+00> : vector<256xf32>
    %8 = vector.multi_reduction <add>, %7, %cst_8 [0] : vector<2x256xf32> to vector<256xf32>
    %9 = vector.shape_cast %8 : vector<256xf32> to vector<1x256xf32>
    %cst_9 = arith.constant 3.125000e-02 : f32
    %10 = vector.broadcast %cst_9 : f32 to vector<1x256xf32>
    %11 = arith.mulf %9, %10 : vector<1x256xf32>
    %12 = vector.broadcast %11 : vector<1x256xf32> to vector<2x256xf32>
    %13 = arith.subf %5, %12 : vector<2x256xf32>
    %14 = arith.mulf %13, %13 : vector<2x256xf32>
    %cst_10 = arith.constant dense<0.000000e+00> : vector<2x256xf32>
    %15 = tpu.matmul %14, %6, %cst_10 {dimension_numbers = #tpu.dot_dimension_numbers<[1], [0], [0], [1], [0, 0, 1, 1], [], []>} : vector<2x256xf32>, vector<256x256xf32>, vector<2x256xf32> -> vector<2x256xf32>
    %cst_11 = arith.constant dense<0.000000e+00> : vector<256xf32>
    %16 = vector.multi_reduction <add>, %15, %cst_11 [0] : vector<2x256xf32> to vector<256xf32>
    %17 = vector.shape_cast %16 : vector<256xf32> to vector<1x256xf32>
    %cst_12 = arith.constant 3.125000e-02 : f32
    %18 = vector.broadcast %cst_12 : f32 to vector<1x256xf32>
    %19 = arith.mulf %17, %18 : vector<1x256xf32>
    %cst_13 = arith.constant 9.99999974E-6 : f32
    %20 = vector.broadcast %cst_13 : f32 to vector<1x256xf32>
    %21 = arith.addf %19, %20 : vector<1x256xf32>
    %22 = math.rsqrt %21 : vector<1x256xf32>
    %23 = vector.broadcast %22 : vector<1x256xf32> to vector<2x256xf32>
    %24 = arith.mulf %13, %23 : vector<2x256xf32>
    %c0_14 = arith.constant 0 : index
    %c0_15 = arith.constant 0 : index
    %25 = vector.load %arg4[%c0_14, %c0_15] : memref<1x256xf32, #tpu.memory_space<vmem>>, vector<1x256xf32>
    %26 = vector.broadcast %25 : vector<1x256xf32> to vector<2x256xf32>
    %27 = arith.mulf %24, %26 : vector<2x256xf32>
    %c0_16 = arith.constant 0 : index
    %c0_17 = arith.constant 0 : index
    %28 = vector.load %arg5[%c0_16, %c0_17] : memref<1x256xf32, #tpu.memory_space<vmem>>, vector<1x256xf32>
    %29 = vector.broadcast %28 : vector<1x256xf32> to vector<2x256xf32>
    %30 = arith.addf %27, %29 : vector<2x256xf32>
    %cst_18 = arith.constant 0.000000e+00 : f32
    %31 = vector.broadcast %cst_18 : f32 to vector<2x64xf32>
    %c0_19 = arith.constant 0 : index
    %c0_20 = arith.constant 0 : index
    %c0_21 = arith.constant 0 : index
    %32 = vector.load %arg15[%c0_19, %c0_20, %c0_21] : memref<2x10x64xf32, #tpu.memory_space<vmem>>, vector<2x1x64xf32>
    %33 = vector.shape_cast %32 : vector<2x1x64xf32> to vector<2x64xf32>
    %34 = vector.shape_cast %31 : vector<2x64xf32> to vector<2x1x64xf32>
    tpu.vector_store %arg15[%c0_19, %c0_20, %c0_21], %34 {strides = array<i32>} : memref<2x10x64xf32, #tpu.memory_space<vmem>>, vector<2x1x64xf32>,
    %c0_22 = arith.constant 0 : index
    %c9 = arith.constant 9 : index
    %c0_23 = arith.constant 0 : index
    %35 = vector.load %arg15[%c0_22, %c9, %c0_23] : memref<2x10x64xf32, #tpu.memory_space<vmem>>, vector<2x1x64xf32>
    %36 = vector.shape_cast %35 : vector<2x1x64xf32> to vector<2x64xf32>
    %37 = vector.shape_cast %31 : vector<2x64xf32> to vector<2x1x64xf32>
    tpu.vector_store %arg15[%c0_22, %c9, %c0_23], %37 {strides = array<i32>} : memref<2x10x64xf32, #tpu.memory_space<vmem>>, vector<2x1x64xf32>,
    %38 = vector.extract_strided_slice %30 {offsets = [0, 0], sizes = [2, 64], strides = [1, 1]} : vector<2x256xf32> to vector<2x64xf32>
    %39 = vector.shape_cast %38 : vector<2x64xf32> to vector<2x1x64xf32>
    %40 = vector.shape_cast %39 : vector<2x1x64xf32> to vector<2x1x64xf32>
    %41 = vector.broadcast %40 : vector<2x1x64xf32> to vector<2x2x64xf32>
    %c0_24 = arith.constant 0 : index
    %c1 = arith.constant 1 : index
    %c0_25 = arith.constant 0 : index
    %42 = vector.load %arg15[%c0_24, %c1, %c0_25] : memref<2x10x64xf32, #tpu.memory_space<vmem>>, vector<2x2x64xf32>
    tpu.vector_store %arg15[%c0_24, %c1, %c0_25], %41 {strides = array<i32>} : memref<2x10x64xf32, #tpu.memory_space<vmem>>, vector<2x2x64xf32>,
    %43 = vector.extract_strided_slice %30 {offsets = [0, 64], sizes = [2, 64], strides = [1, 1]} : vector<2x256xf32> to vector<2x64xf32>
    %44 = vector.shape_cast %43 : vector<2x64xf32> to vector<2x1x64xf32>
    %45 = vector.shape_cast %44 : vector<2x1x64xf32> to vector<2x1x64xf32>
    %46 = vector.broadcast %45 : vector<2x1x64xf32> to vector<2x2x64xf32>
    %c0_26 = arith.constant 0 : index
    %c3 = arith.constant 3 : index
    %c0_27 = arith.constant 0 : index
    %47 = vector.load %arg15[%c0_26, %c3, %c0_27] : memref<2x10x64xf32, #tpu.memory_space<vmem>>, vector<2x2x64xf32>
    tpu.vector_store %arg15[%c0_26, %c3, %c0_27], %46 {strides = array<i32>} : memref<2x10x64xf32, #tpu.memory_space<vmem>>, vector<2x2x64xf32>,
    %48 = vector.extract_strided_slice %30 {offsets = [0, 128], sizes = [2, 64], strides = [1, 1]} : vector<2x256xf32> to vector<2x64xf32>
    %49 = vector.shape_cast %48 : vector<2x64xf32> to vector<2x1x64xf32>
    %50 = vector.shape_cast %49 : vector<2x1x64xf32> to vector<2x1x64xf32>
    %51 = vector.broadcast %50 : vector<2x1x64xf32> to vector<2x2x64xf32>
    %c0_28 = arith.constant 0 : index
    %c5 = arith.constant 5 : index
    %c0_29 = arith.constant 0 : index
    %52 = vector.load %arg15[%c0_28, %c5, %c0_29] : memref<2x10x64xf32, #tpu.memory_space<vmem>>, vector<2x2x64xf32>
    tpu.vector_store %arg15[%c0_28, %c5, %c0_29], %51 {strides = array<i32>} : memref<2x10x64xf32, #tpu.memory_space<vmem>>, vector<2x2x64xf32>,
    %53 = vector.extract_strided_slice %30 {offsets = [0, 192], sizes = [2, 64], strides = [1, 1]} : vector<2x256xf32> to vector<2x64xf32>
    %54 = vector.shape_cast %53 : vector<2x64xf32> to vector<2x1x64xf32>
    %55 = vector.shape_cast %54 : vector<2x1x64xf32> to vector<2x1x64xf32>
    %56 = vector.broadcast %55 : vector<2x1x64xf32> to vector<2x2x64xf32>
    %c0_30 = arith.constant 0 : index
    %c7 = arith.constant 7 : index
    %c0_31 = arith.constant 0 : index
    %57 = vector.load %arg15[%c0_30, %c7, %c0_31] : memref<2x10x64xf32, #tpu.memory_space<vmem>>, vector<2x2x64xf32>
    tpu.vector_store %arg15[%c0_30, %c7, %c0_31], %56 {strides = array<i32>} : memref<2x10x64xf32, #tpu.memory_space<vmem>>, vector<2x2x64xf32>,
    %c0_32 = arith.constant 0 : index
    %c0_33 = arith.constant 0 : index
    %c0_34 = arith.constant 0 : index
    %58 = vector.load %arg15[%c0_32, %c0_33, %c0_34] : memref<2x10x64xf32, #tpu.memory_space<vmem>>, vector<2x8x64xf32>
    %59 = vector.shape_cast %58 : vector<2x8x64xf32> to vector<16x64xf32>
    %c0_35 = arith.constant 0 : index
    %c0_36 = arith.constant 0 : index
    %c0_37 = arith.constant 0 : index
    %60 = vector.load %arg6[%c0_35, %c0_36, %c0_37] : memref<3x64x64xf32, #tpu.memory_space<vmem>>, vector<1x64x64xf32>
    %61 = vector.shape_cast %60 : vector<1x64x64xf32> to vector<64x64xf32>
    %cst_38 = arith.constant dense<0.000000e+00> : vector<16x64xf32>
    %62 = tpu.matmul %59, %61, %cst_38 {dimension_numbers = #tpu.dot_dimension_numbers<[1], [0], [0], [1], [0, 0, 1, 1], [], []>} : vector<16x64xf32>, vector<64x64xf32>, vector<16x64xf32> -> vector<16x64xf32>
    %c0_39 = arith.constant 0 : index
    %c1_40 = arith.constant 1 : index
    %c0_41 = arith.constant 0 : index
    %63 = vector.load %arg15[%c0_39, %c1_40, %c0_41] : memref<2x10x64xf32, #tpu.memory_space<vmem>>, vector<2x8x64xf32>
    %64 = vector.shape_cast %63 : vector<2x8x64xf32> to vector<16x64xf32>
    %c1_42 = arith.constant 1 : index
    %c0_43 = arith.constant 0 : index
    %c0_44 = arith.constant 0 : index
    %65 = vector.load %arg6[%c1_42, %c0_43, %c0_44] : memref<3x64x64xf32, #tpu.memory_space<vmem>>, vector<1x64x64xf32>
    %66 = vector.shape_cast %65 : vector<1x64x64xf32> to vector<64x64xf32>
    %cst_45 = arith.constant dense<0.000000e+00> : vector<16x64xf32>
    %67 = tpu.matmul %64, %66, %cst_45 {dimension_numbers = #tpu.dot_dimension_numbers<[1], [0], [0], [1], [0, 0, 1, 1], [], []>} : vector<16x64xf32>, vector<64x64xf32>, vector<16x64xf32> -> vector<16x64xf32>
    %68 = arith.addf %62, %67 : vector<16x64xf32>
    %c0_46 = arith.constant 0 : index
    %c2 = arith.constant 2 : index
    %c0_47 = arith.constant 0 : index
    %69 = vector.load %arg15[%c0_46, %c2, %c0_47] : memref<2x10x64xf32, #tpu.memory_space<vmem>>, vector<2x8x64xf32>
    %70 = vector.shape_cast %69 : vector<2x8x64xf32> to vector<16x64xf32>
    %c2_48 = arith.constant 2 : index
    %c0_49 = arith.constant 0 : index
    %c0_50 = arith.constant 0 : index
    %71 = vector.load %arg6[%c2_48, %c0_49, %c0_50] : memref<3x64x64xf32, #tpu.memory_space<vmem>>, vector<1x64x64xf32>
    %72 = vector.shape_cast %71 : vector<1x64x64xf32> to vector<64x64xf32>
    %cst_51 = arith.constant dense<0.000000e+00> : vector<16x64xf32>
    %73 = tpu.matmul %70, %72, %cst_51 {dimension_numbers = #tpu.dot_dimension_numbers<[1], [0], [0], [1], [0, 0, 1, 1], [], []>} : vector<16x64xf32>, vector<64x64xf32>, vector<16x64xf32> -> vector<16x64xf32>
    %74 = arith.addf %68, %73 : vector<16x64xf32>
    %c0_52 = arith.constant 0 : index
    %c0_53 = arith.constant 0 : index
    %75 = vector.load %arg7[%c0_52, %c0_53] : memref<1x64xf32, #tpu.memory_space<vmem>>, vector<1x64xf32>
    %76 = vector.broadcast %75 : vector<1x64xf32> to vector<16x64xf32>
    %77 = arith.addf %74, %76 : vector<16x64xf32>
    %c0_54 = arith.constant 0 : index
    %c0_55 = arith.constant 0 : index
    %78 = vector.load %arg8[%c0_54, %c0_55] : memref<64x64xf32, #tpu.memory_space<vmem>>, vector<64x64xf32>
    %cst_56 = arith.constant dense<0.000000e+00> : vector<16x64xf32>
    %79 = tpu.matmul %77, %78, %cst_56 {dimension_numbers = #tpu.dot_dimension_numbers<[1], [0], [0], [1], [0, 0, 1, 1], [], []>} : vector<16x64xf32>, vector<64x64xf32>, vector<16x64xf32> -> vector<16x64xf32>
    %cst_57 = arith.constant dense<0.000000e+00> : vector<64xf32>
    %80 = vector.multi_reduction <add>, %79, %cst_57 [0] : vector<16x64xf32> to vector<64xf32>
    %81 = vector.shape_cast %80 : vector<64xf32> to vector<1x64xf32>
    %cst_58 = arith.constant 7.812500e-03 : f32
    %82 = vector.broadcast %cst_58 : f32 to vector<1x64xf32>
    %83 = arith.mulf %81, %82 : vector<1x64xf32>
    %84 = vector.broadcast %83 : vector<1x64xf32> to vector<16x64xf32>
    %85 = arith.subf %77, %84 : vector<16x64xf32>
    %86 = arith.mulf %85, %85 : vector<16x64xf32>
    %cst_59 = arith.constant dense<0.000000e+00> : vector<16x64xf32>
    %87 = tpu.matmul %86, %78, %cst_59 {dimension_numbers = #tpu.dot_dimension_numbers<[1], [0], [0], [1], [0, 0, 1, 1], [], []>} : vector<16x64xf32>, vector<64x64xf32>, vector<16x64xf32> -> vector<16x64xf32>
    %cst_60 = arith.constant dense<0.000000e+00> : vector<64xf32>
    %88 = vector.multi_reduction <add>, %87, %cst_60 [0] : vector<16x64xf32> to vector<64xf32>
    %89 = vector.shape_cast %88 : vector<64xf32> to vector<1x64xf32>
    %cst_61 = arith.constant 7.812500e-03 : f32
    %90 = vector.broadcast %cst_61 : f32 to vector<1x64xf32>
    %91 = arith.mulf %89, %90 : vector<1x64xf32>
    %cst_62 = arith.constant 9.99999974E-6 : f32
    %92 = vector.broadcast %cst_62 : f32 to vector<1x64xf32>
    %93 = arith.addf %91, %92 : vector<1x64xf32>
    %94 = math.rsqrt %93 : vector<1x64xf32>
    %95 = vector.broadcast %94 : vector<1x64xf32> to vector<16x64xf32>
    %96 = arith.mulf %85, %95 : vector<16x64xf32>
    %c0_63 = arith.constant 0 : index
    %c0_64 = arith.constant 0 : index
    %97 = vector.load %arg9[%c0_63, %c0_64] : memref<1x64xf32, #tpu.memory_space<vmem>>, vector<1x64xf32>
    %98 = vector.broadcast %97 : vector<1x64xf32> to vector<16x64xf32>
    %99 = arith.mulf %96, %98 : vector<16x64xf32>
    %c0_65 = arith.constant 0 : index
    %c0_66 = arith.constant 0 : index
    %100 = vector.load %arg10[%c0_65, %c0_66] : memref<1x64xf32, #tpu.memory_space<vmem>>, vector<1x64xf32>
    %101 = vector.broadcast %100 : vector<1x64xf32> to vector<16x64xf32>
    %102 = arith.addf %99, %101 : vector<16x64xf32>
    %cst_67 = arith.constant 0.000000e+00 : f32
    %103 = vector.broadcast %cst_67 : f32 to vector<16x64xf32>
    %104 = arith.cmpf oge, %102, %103 : vector<16x64xf32>
    %cst_68 = arith.constant 2.000000e-01 : f32
    %105 = vector.broadcast %cst_68 : f32 to vector<16x64xf32>
    %106 = arith.mulf %105, %102 : vector<16x64xf32>
    %107 = arith.select %104, %102, %106 : vector<16x64xi1>, vector<16x64xf32>
    %108 = vector.shape_cast %107 : vector<16x64xf32> to vector<2x8x64xf32>
    %cst_69 = arith.constant 0.000000e+00 : f32
    %109 = vector.broadcast %cst_69 : f32 to vector<2x64xf32>
    %c0_70 = arith.constant 0 : index
    %c0_71 = arith.constant 0 : index
    %c0_72 = arith.constant 0 : index
    %110 = vector.load %arg16[%c0_70, %c0_71, %c0_72] : memref<2x18x64xf32, #tpu.memory_space<vmem>>, vector<2x1x64xf32>
    %111 = vector.shape_cast %110 : vector<2x1x64xf32> to vector<2x64xf32>
    %112 = vector.shape_cast %109 : vector<2x64xf32> to vector<2x1x64xf32>
    tpu.vector_store %arg16[%c0_70, %c0_71, %c0_72], %112 {strides = array<i32>} : memref<2x18x64xf32, #tpu.memory_space<vmem>>, vector<2x1x64xf32>,
    %c0_73 = arith.constant 0 : index
    %c17 = arith.constant 17 : index
    %c0_74 = arith.constant 0 : index
    %113 = vector.load %arg16[%c0_73, %c17, %c0_74] : memref<2x18x64xf32, #tpu.memory_space<vmem>>, vector<2x1x64xf32>
    %114 = vector.shape_cast %113 : vector<2x1x64xf32> to vector<2x64xf32>
    %115 = vector.shape_cast %109 : vector<2x64xf32> to vector<2x1x64xf32>
    tpu.vector_store %arg16[%c0_73, %c17, %c0_74], %115 {strides = array<i32>} : memref<2x18x64xf32, #tpu.memory_space<vmem>>, vector<2x1x64xf32>,
    %116 = vector.extract_strided_slice %108 {offsets = [0, 0, 0], sizes = [2, 1, 64], strides = [1, 1, 1]} : vector<2x8x64xf32> to vector<2x1x64xf32>
    %117 = vector.shape_cast %116 : vector<2x1x64xf32> to vector<2x1x64xf32>
    %118 = vector.broadcast %117 : vector<2x1x64xf32> to vector<2x2x64xf32>
    %c0_75 = arith.constant 0 : index
    %c1_76 = arith.constant 1 : index
    %c0_77 = arith.constant 0 : index
    %119 = vector.load %arg16[%c0_75, %c1_76, %c0_77] : memref<2x18x64xf32, #tpu.memory_space<vmem>>, vector<2x2x64xf32>
    tpu.vector_store %arg16[%c0_75, %c1_76, %c0_77], %118 {strides = array<i32>} : memref<2x18x64xf32, #tpu.memory_space<vmem>>, vector<2x2x64xf32>,
    %120 = vector.extract_strided_slice %108 {offsets = [0, 1, 0], sizes = [2, 1, 64], strides = [1, 1, 1]} : vector<2x8x64xf32> to vector<2x1x64xf32>
    %121 = vector.shape_cast %120 : vector<2x1x64xf32> to vector<2x1x64xf32>
    %122 = vector.broadcast %121 : vector<2x1x64xf32> to vector<2x2x64xf32>
    %c0_78 = arith.constant 0 : index
    %c3_79 = arith.constant 3 : index
    %c0_80 = arith.constant 0 : index
    %123 = vector.load %arg16[%c0_78, %c3_79, %c0_80] : memref<2x18x64xf32, #tpu.memory_space<vmem>>, vector<2x2x64xf32>
    tpu.vector_store %arg16[%c0_78, %c3_79, %c0_80], %122 {strides = array<i32>} : memref<2x18x64xf32, #tpu.memory_space<vmem>>, vector<2x2x64xf32>,
    %124 = vector.extract_strided_slice %108 {offsets = [0, 2, 0], sizes = [2, 1, 64], strides = [1, 1, 1]} : vector<2x8x64xf32> to vector<2x1x64xf32>
    %125 = vector.shape_cast %124 : vector<2x1x64xf32> to vector<2x1x64xf32>
    %126 = vector.broadcast %125 : vector<2x1x64xf32> to vector<2x2x64xf32>
    %c0_81 = arith.constant 0 : index
    %c5_82 = arith.constant 5 : index
    %c0_83 = arith.constant 0 : index
    %127 = vector.load %arg16[%c0_81, %c5_82, %c0_83] : memref<2x18x64xf32, #tpu.memory_space<vmem>>, vector<2x2x64xf32>
    tpu.vector_store %arg16[%c0_81, %c5_82, %c0_83], %126 {strides = array<i32>} : memref<2x18x64xf32, #tpu.memory_space<vmem>>, vector<2x2x64xf32>,
    %128 = vector.extract_strided_slice %108 {offsets = [0, 3, 0], sizes = [2, 1, 64], strides = [1, 1, 1]} : vector<2x8x64xf32> to vector<2x1x64xf32>
    %129 = vector.shape_cast %128 : vector<2x1x64xf32> to vector<2x1x64xf32>
    %130 = vector.broadcast %129 : vector<2x1x64xf32> to vector<2x2x64xf32>
    %c0_84 = arith.constant 0 : index
    %c7_85 = arith.constant 7 : index
    %c0_86 = arith.constant 0 : index
    %131 = vector.load %arg16[%c0_84, %c7_85, %c0_86] : memref<2x18x64xf32, #tpu.memory_space<vmem>>, vector<2x2x64xf32>
    tpu.vector_store %arg16[%c0_84, %c7_85, %c0_86], %130 {strides = array<i32>} : memref<2x18x64xf32, #tpu.memory_space<vmem>>, vector<2x2x64xf32>,
    %132 = vector.extract_strided_slice %108 {offsets = [0, 4, 0], sizes = [2, 1, 64], strides = [1, 1, 1]} : vector<2x8x64xf32> to vector<2x1x64xf32>
    %133 = vector.shape_cast %132 : vector<2x1x64xf32> to vector<2x1x64xf32>
    %134 = vector.broadcast %133 : vector<2x1x64xf32> to vector<2x2x64xf32>
    %c0_87 = arith.constant 0 : index
    %c9_88 = arith.constant 9 : index
    %c0_89 = arith.constant 0 : index
    %135 = vector.load %arg16[%c0_87, %c9_88, %c0_89] : memref<2x18x64xf32, #tpu.memory_space<vmem>>, vector<2x2x64xf32>
    tpu.vector_store %arg16[%c0_87, %c9_88, %c0_89], %134 {strides = array<i32>} : memref<2x18x64xf32, #tpu.memory_space<vmem>>, vector<2x2x64xf32>,
    %136 = vector.extract_strided_slice %108 {offsets = [0, 5, 0], sizes = [2, 1, 64], strides = [1, 1, 1]} : vector<2x8x64xf32> to vector<2x1x64xf32>
    %137 = vector.shape_cast %136 : vector<2x1x64xf32> to vector<2x1x64xf32>
    %138 = vector.broadcast %137 : vector<2x1x64xf32> to vector<2x2x64xf32>
    %c0_90 = arith.constant 0 : index
    %c11 = arith.constant 11 : index
    %c0_91 = arith.constant 0 : index
    %139 = vector.load %arg16[%c0_90, %c11, %c0_91] : memref<2x18x64xf32, #tpu.memory_space<vmem>>, vector<2x2x64xf32>
    tpu.vector_store %arg16[%c0_90, %c11, %c0_91], %138 {strides = array<i32>} : memref<2x18x64xf32, #tpu.memory_space<vmem>>, vector<2x2x64xf32>,
    %140 = vector.extract_strided_slice %108 {offsets = [0, 6, 0], sizes = [2, 1, 64], strides = [1, 1, 1]} : vector<2x8x64xf32> to vector<2x1x64xf32>
    %141 = vector.shape_cast %140 : vector<2x1x64xf32> to vector<2x1x64xf32>
    %142 = vector.broadcast %141 : vector<2x1x64xf32> to vector<2x2x64xf32>
    %c0_92 = arith.constant 0 : index
    %c13 = arith.constant 13 : index
    %c0_93 = arith.constant 0 : index
    %143 = vector.load %arg16[%c0_92, %c13, %c0_93] : memref<2x18x64xf32, #tpu.memory_space<vmem>>, vector<2x2x64xf32>
    tpu.vector_store %arg16[%c0_92, %c13, %c0_93], %142 {strides = array<i32>} : memref<2x18x64xf32, #tpu.memory_space<vmem>>, vector<2x2x64xf32>,
    %144 = vector.extract_strided_slice %108 {offsets = [0, 7, 0], sizes = [2, 1, 64], strides = [1, 1, 1]} : vector<2x8x64xf32> to vector<2x1x64xf32>
    %145 = vector.shape_cast %144 : vector<2x1x64xf32> to vector<2x1x64xf32>
    %146 = vector.broadcast %145 : vector<2x1x64xf32> to vector<2x2x64xf32>
    %c0_94 = arith.constant 0 : index
    %c15 = arith.constant 15 : index
    %c0_95 = arith.constant 0 : index
    %147 = vector.load %arg16[%c0_94, %c15, %c0_95] : memref<2x18x64xf32, #tpu.memory_space<vmem>>, vector<2x2x64xf32>
    tpu.vector_store %arg16[%c0_94, %c15, %c0_95], %146 {strides = array<i32>} : memref<2x18x64xf32, #tpu.memory_space<vmem>>, vector<2x2x64xf32>,
    %c0_96 = arith.constant 0 : index
    %c0_97 = arith.constant 0 : index
    %c0_98 = arith.constant 0 : index
    %148 = vector.load %arg16[%c0_96, %c0_97, %c0_98] : memref<2x18x64xf32, #tpu.memory_space<vmem>>, vector<2x16x64xf32>
    %149 = vector.shape_cast %148 : vector<2x16x64xf32> to vector<32x64xf32>
    %c0_99 = arith.constant 0 : index
    %c0_100 = arith.constant 0 : index
    %c0_101 = arith.constant 0 : index
    %150 = vector.load %arg11[%c0_99, %c0_100, %c0_101] : memref<3x64x128xf32, #tpu.memory_space<vmem>>, vector<1x64x128xf32>
    %151 = vector.shape_cast %150 : vector<1x64x128xf32> to vector<64x128xf32>
    %cst_102 = arith.constant dense<0.000000e+00> : vector<32x128xf32>
    %152 = tpu.matmul %149, %151, %cst_102 {dimension_numbers = #tpu.dot_dimension_numbers<[1], [0], [0], [1], [0, 0, 1, 1], [], []>} : vector<32x64xf32>, vector<64x128xf32>, vector<32x128xf32> -> vector<32x128xf32>
    %c0_103 = arith.constant 0 : index
    %c1_104 = arith.constant 1 : index
    %c0_105 = arith.constant 0 : index
    %153 = vector.load %arg16[%c0_103, %c1_104, %c0_105] : memref<2x18x64xf32, #tpu.memory_space<vmem>>, vector<2x16x64xf32>
    %154 = vector.shape_cast %153 : vector<2x16x64xf32> to vector<32x64xf32>
    %c1_106 = arith.constant 1 : index
    %c0_107 = arith.constant 0 : index
    %c0_108 = arith.constant 0 : index
    %155 = vector.load %arg11[%c1_106, %c0_107, %c0_108] : memref<3x64x128xf32, #tpu.memory_space<vmem>>, vector<1x64x128xf32>
    %156 = vector.shape_cast %155 : vector<1x64x128xf32> to vector<64x128xf32>
    %cst_109 = arith.constant dense<0.000000e+00> : vector<32x128xf32>
    %157 = tpu.matmul %154, %156, %cst_109 {dimension_numbers = #tpu.dot_dimension_numbers<[1], [0], [0], [1], [0, 0, 1, 1], [], []>} : vector<32x64xf32>, vector<64x128xf32>, vector<32x128xf32> -> vector<32x128xf32>
    %158 = arith.addf %152, %157 : vector<32x128xf32>
    %c0_110 = arith.constant 0 : index
    %c2_111 = arith.constant 2 : index
    %c0_112 = arith.constant 0 : index
    %159 = vector.load %arg16[%c0_110, %c2_111, %c0_112] : memref<2x18x64xf32, #tpu.memory_space<vmem>>, vector<2x16x64xf32>
    %160 = vector.shape_cast %159 : vector<2x16x64xf32> to vector<32x64xf32>
    %c2_113 = arith.constant 2 : index
    %c0_114 = arith.constant 0 : index
    %c0_115 = arith.constant 0 : index
    %161 = vector.load %arg11[%c2_113, %c0_114, %c0_115] : memref<3x64x128xf32, #tpu.memory_space<vmem>>, vector<1x64x128xf32>
    %162 = vector.shape_cast %161 : vector<1x64x128xf32> to vector<64x128xf32>
    %cst_116 = arith.constant dense<0.000000e+00> : vector<32x128xf32>
    %163 = tpu.matmul %160, %162, %cst_116 {dimension_numbers = #tpu.dot_dimension_numbers<[1], [0], [0], [1], [0, 0, 1, 1], [], []>} : vector<32x64xf32>, vector<64x128xf32>, vector<32x128xf32> -> vector<32x128xf32>
    %164 = arith.addf %158, %163 : vector<32x128xf32>
    %c0_117 = arith.constant 0 : index
    %c0_118 = arith.constant 0 : index
    %165 = vector.load %arg12[%c0_117, %c0_118] : memref<1x128xf32, #tpu.memory_space<vmem>>, vector<1x128xf32>
    %166 = vector.broadcast %165 : vector<1x128xf32> to vector<32x128xf32>
    %167 = arith.addf %164, %166 : vector<32x128xf32>
    %168 = math.tanh %167 : vector<32x128xf32>
    %c0_119 = arith.constant 0 : index
    %c0_120 = arith.constant 0 : index
    %169 = vector.load %arg13[%c0_119, %c0_120] : memref<128x128xf32, #tpu.memory_space<vmem>>, vector<128x128xf32>
    %cst_121 = arith.constant dense<0.000000e+00> : vector<32x128xf32>
    %170 = tpu.matmul %168, %169, %cst_121 {dimension_numbers = #tpu.dot_dimension_numbers<[1], [0], [0], [1], [0, 0, 1, 1], [], []>} : vector<32x128xf32>, vector<128x128xf32>, vector<32x128xf32> -> vector<32x128xf32>
    %cst_122 = arith.constant dense<0.000000e+00> : vector<128xf32>
    %171 = vector.multi_reduction <add>, %170, %cst_122 [0] : vector<32x128xf32> to vector<128xf32>
    %172 = vector.shape_cast %171 : vector<128xf32> to vector<1x128xf32>
    %cst_123 = arith.constant 0.001953125 : f32
    %173 = vector.broadcast %cst_123 : f32 to vector<1x128xf32>
    %174 = arith.mulf %172, %173 : vector<1x128xf32>
    %175 = vector.broadcast %174 : vector<1x128xf32> to vector<32x128xf32>
    %176 = arith.subf %168, %175 : vector<32x128xf32>
    %177 = arith.mulf %176, %176 : vector<32x128xf32>
    %cst_124 = arith.constant dense<0.000000e+00> : vector<32x128xf32>
    %178 = tpu.matmul %177, %169, %cst_124 {dimension_numbers = #tpu.dot_dimension_numbers<[1], [0], [0], [1], [0, 0, 1, 1], [], []>} : vector<32x128xf32>, vector<128x128xf32>, vector<32x128xf32> -> vector<32x128xf32>
    %cst_125 = arith.constant dense<0.000000e+00> : vector<128xf32>
    %179 = vector.multi_reduction <add>, %178, %cst_125 [0] : vector<32x128xf32> to vector<128xf32>
    %180 = vector.shape_cast %179 : vector<128xf32> to vector<1x128xf32>
    %cst_126 = arith.constant 0.001953125 : f32
    %181 = vector.broadcast %cst_126 : f32 to vector<1x128xf32>
    %182 = arith.mulf %180, %181 : vector<1x128xf32>
    %cst_127 = arith.constant 9.99999974E-6 : f32
    %183 = vector.broadcast %cst_127 : f32 to vector<1x128xf32>
    %184 = arith.addf %182, %183 : vector<1x128xf32>
    %185 = math.rsqrt %184 : vector<1x128xf32>
    %186 = vector.broadcast %185 : vector<1x128xf32> to vector<32x128xf32>
    %187 = arith.mulf %176, %186 : vector<32x128xf32>
    %c0_128 = arith.constant 0 : index
    %c0_129 = arith.constant 0 : index
    %188 = vector.load %arg14[%c0_128, %c0_129] : memref<32x128xf32, #tpu.memory_space<vmem>>, vector<32x128xf32>
    tpu.vector_store %arg14[%c0_128, %c0_129], %187 {strides = array<i32>} : memref<32x128xf32, #tpu.memory_space<vmem>>, vector<32x128xf32>,
    return
  }
}

</mosaic_0001>

<bundles_post_ra>
// kernel: tpu_custom_call.1
= control target key start
LH: loop header
LB: loop body
LE: loop exit
PB: predicated region body
PF: predicated region fallthrough
CT: control target
= control target key end

     0   :  { %19 = vsyncpa [#allocation5], 0  ;;  %s3094_s0 = inlined_call_operand.hbm [shape: f32[2,32], index: 0, kind: input, shape index: {}]   ;;  %s3095_s1 = inlined_call_operand.hbm [shape: f32[32,256], index: 1, kind: input, shape index: {}]   ;;  %s3096_s2 = inlined_call_operand.vmem [shape: f32[1,256], index: 2, kind: input, shape index: {}]   ;;  %s3097_s3 = inlined_call_operand.hbm [shape: f32[256,256], index: 3, kind: input, shape index: {}]   ;;  %s3098_s4 = inlined_call_operand.vmem [shape: f32[1,256], index: 4, kind: input, shape index: {}]   ;;  %s3099_s5 = inlined_call_operand.vmem [shape: f32[1,256], index: 5, kind: input, shape index: {}]   ;;  %s3100_s6 = inlined_call_operand.hbm [shape: f32[3,64,64], index: 6, kind: input, shape index: {}]   ;;  %s3101_s7 = inlined_call_operand.vmem [shape: f32[1,64], index: 7, kind: input, shape index: {}]   ;;  %s3102_s8 = inlined_call_operand.hbm [shape: f32[64,64], index: 8, kind: input, shape index: {}]   ;;  %s3103_s9 = inlined_call_operand.vmem [shape: f32[1,64], index: 9, kind: input, shape index: {}]   ;;  %s3104_s10 = inlined_call_operand.vmem [shape: f32[1,64], index: 10, kind: input, shape index: {}]   ;;  %s3105_s11 = inlined_call_operand.hbm [shape: f32[3,64,128], index: 11, kind: input, shape index: {}]   ;;  %s3106_s12 = inlined_call_operand.vmem [shape: f32[1,128], index: 12, kind: input, shape index: {}]   ;;  %s3107_s13 = inlined_call_operand.hbm [shape: f32[128,128], index: 13, kind: input, shape index: {}]   ;;  %s3108_s14 = inlined_call_operand.hbm [shape: f32[32,128], index: 14, kind: output, shape index: {}]  }
   0x1   :  { %20 = vsyncpa [#allocation8], 0 }
   0x2   :  { %21 = vsyncpa [#allocation11], 0 }
   0x3   :  { %22 = vsyncpa [#allocation14], 0 }
   0x4   :  { %23 = vsyncpa [#allocation6], 0  ;;  %s2738_s29 = smov [#allocation7]   ;;  %s2552_s17 = scalar_lea.hbm %s3095_s1, 1024 }
   0x5   :  { %s39_s30 = sshll.u32 %s2738_s29, 4  ;;  %p2553_p0 = scmp.ne.s32.totalorder %s3095_s1, %s2552_s17  ;;  %s40_s30 = int_to_ptr.vmem [resolvable:$true] %s39_s30 }
   0x6   :  { %p2556_p1 = scmp.lt.u32.totalorder %s2552_s17, %s3095_s1 }
   0x8   :  { %p2558_p2 = pnand %p2556_p1, %p2553_p0 }
   0xa   :  { %2561 = shalt.err (!%p2558_p2)
}
   0xb   :  { %s2562_s22 = scalar_lea.vmem %s40_s30, 1024  ;;  %p2567_p4 = scmp.lt.s32.totalorder %s40_s30, %s40_s30 }
   0xc   :  { %p2563_p3 = scmp.ne.s32.totalorder %s40_s30, %s2562_s22  ;;  %p2568_p5 = scmp.lt.s32.totalorder %s2562_s22, %s2562_s22 }
   0xe   :  { %p2569_p6 = por %p2568_p5, %p2567_p4 }
  0x10   :  { %p2570_p7 = pnand %p2569_p6, %p2563_p3 }
  0x12   :  { %2573 = shalt.err (!%p2570_p7)
}
  0x13   :  { %s3109_s23 = smov 256   ;;  %s2740_s24 = smov 16  }
  0x14   :  { %45 = dma.hbm_to_vmem [thread:$0]  %s3095_s1, 1024, %s40_s30, [#allocation8], %s3109_s23, %s3109_s23, %s2740_s24  }
  0x15   :  { %s2741_s27 = smov [#allocation10]   ;;  %s2574_s16 = scalar_lea.hbm %s3100_s6, 3072 }
  0x16   :  { %s69_s28 = sshll.u32 %s2741_s27, 4  ;;  %p2575_p8 = scmp.ne.s32.totalorder %s3100_s6, %s2574_s16  ;;  %s70_s28 = int_to_ptr.vmem [resolvable:$true] %s69_s28 }
  0x17   :  { %p2578_p9 = scmp.lt.u32.totalorder %s2574_s16, %s3100_s6 }
  0x19   :  { %p2580_p10 = pnand %p2578_p9, %p2575_p8 }
  0x1b   :  { %2583 = shalt.err (!%p2580_p10)
}
  0x1c   :  { %s2584_s21 = scalar_lea.vmem %s70_s28, 3072  ;;  %p2589_p12 = scmp.lt.s32.totalorder %s70_s28, %s70_s28 }
  0x1d   :  { %p2585_p11 = scmp.ne.s32.totalorder %s70_s28, %s2584_s21  ;;  %p2590_p13 = scmp.lt.s32.totalorder %s2584_s21, %s2584_s21 }
  0x1f   :  { %p2591_p0 = por %p2590_p13, %p2589_p12 }
  0x21   :  { %p2592_p1 = pnand %p2591_p0, %p2585_p11 }
  0x23   :  { %2595 = shalt.err (!%p2592_p1)
}
  0x24   :  { %s2742_s1 = smov 128   ;;  %s2743_s30 = smov 8  }
  0x25   :  { %75 = dma.hbm_to_vmem [thread:$0]  %s3100_s6, 3072, %s70_s28, [#allocation11], %s2742_s1, %s2742_s1, %s2743_s30  }
  0x26   :  { %s2744_s26 = smov [#allocation13]   ;;  %s2745_s29 = smov [#allocation4]  }
  0x27   :  { %s99_s27 = sshll.u32 %s2744_s26, 4  ;;  %s30_s15 = sshll.u32 %s2745_s29, 4  ;;  %s100_s27 = int_to_ptr.vmem [resolvable:$true] %s99_s27  ;;  %s31_s15 = int_to_ptr.vmem [resolvable:$true] %s30_s15 }
  0x28   :  { %s2596_s18 = scalar_lea.hbm %s3105_s11, 3072 }
  0x29   :  { %p2597_p2 = scmp.ne.s32.totalorder %s3105_s11, %s2596_s18  ;;  %p2600_p3 = scmp.lt.u32.totalorder %s2596_s18, %s3105_s11 }
  0x2b   :  { %p2602_p4 = pnand %p2600_p3, %p2597_p2 }
  0x2d   :  { %2605 = shalt.err (!%p2602_p4)
}
  0x2e   :  { %s2606_s6 = scalar_lea.vmem %s100_s27, 3072  ;;  %p2611_p6 = scmp.lt.s32.totalorder %s100_s27, %s100_s27 }
  0x2f   :  { %p2607_p5 = scmp.ne.s32.totalorder %s100_s27, %s2606_s6  ;;  %p2612_p7 = scmp.lt.s32.totalorder %s2606_s6, %s2606_s6 }
  0x31   :  { %p2613_p8 = por %p2612_p7, %p2611_p6 }
  0x33   :  { %p2614_p9 = pnand %p2613_p8, %p2607_p5 }
  0x35   :  { %2617 = shalt.err (!%p2614_p9)
}
  0x36   :  { %105 = dma.hbm_to_vmem [thread:$0]  %s3105_s11, 3072, %s100_s27, [#allocation14], %s2742_s1, %s2742_s1, %s2743_s30  }
  0x37   :  { %s2618_s23 = scalar_lea.hbm %s3094_s0, 32 }
  0x38   :  { %p2619_p10 = scmp.ne.s32.totalorder %s3094_s0, %s2618_s23  ;;  %p2622_p11 = scmp.lt.u32.totalorder %s2618_s23, %s3094_s0 }
  0x3a   :  { %p2624_p12 = pnand %p2622_p11, %p2619_p10 }
  0x3c   :  { %2627 = shalt.err (!%p2624_p12)
}
  0x3d   :  { %s2628_s19 = scalar_lea.vmem %s31_s15, 32  ;;  %p2633_p0 = scmp.lt.s32.totalorder %s31_s15, %s31_s15 }
  0x3e   :  { %p2629_p13 = scmp.ne.s32.totalorder %s31_s15, %s2628_s19  ;;  %p2634_p1 = scmp.lt.s32.totalorder %s2628_s19, %s2628_s19 }
  0x40   :  { %p2635_p2 = por %p2634_p1, %p2633_p0 }
  0x42   :  { %p2636_p3 = pnand %p2635_p2, %p2629_p13 }
  0x44   :  { %2639 = shalt.err (!%p2636_p3)
}
  0x45   :  { %33 = dma.hbm_to_vmem [thread:$0]  %s3094_s0, 32, %s31_s15, [#allocation5]  }
  0x46   :  { %s2746_s20 = smov [#allocation9]   ;;  %s2747_s6 = smov [#allocation12]  }
  0x47   :  { %s53_s21 = sshll.u32 %s2746_s20, 4  ;;  %s83_s28 = sshll.u32 %s2747_s6, 4  ;;  %s54_s21 = int_to_ptr.vmem [resolvable:$true] %s53_s21  ;;  %s2885_s28 = int_to_ptr.vmem [resolvable:$true] %s83_s28 }
  0x48   :  { %s2640_s26 = scalar_lea.hbm %s3097_s3, 8192 }
  0x49   :  { %p2641_p4 = scmp.ne.s32.totalorder %s3097_s3, %s2640_s26  ;;  %p2644_p5 = scmp.lt.u32.totalorder %s2640_s26, %s3097_s3 }
  0x4b   :  { %p2646_p6 = pnand %p2644_p5, %p2641_p4 }
  0x4d   :  { %2649 = shalt.err (!%p2646_p6)
}
  0x4e   :  { %s2650_s0 = scalar_lea.vmem %s54_s21, 8192  ;;  %p2655_p8 = scmp.lt.s32.totalorder %s54_s21, %s54_s21 }
  0x4f   :  { %p2651_p7 = scmp.ne.s32.totalorder %s54_s21, %s2650_s0  ;;  %p2656_p9 = scmp.lt.s32.totalorder %s2650_s0, %s2650_s0 }
  0x51   :  { %p2657_p10 = por %p2656_p9, %p2655_p8 }
  0x53   :  { %p2658_p11 = pnand %p2657_p10, %p2651_p7 }
  0x55   :  { %2661 = shalt.err (!%p2658_p11)
}
  0x56   :  { %s3110_s15 = smov 256   ;;  %s2662_s20 = scalar_lea.hbm %s3102_s8, 1024 }
  0x57   :  { %59 = dma.hbm_to_vmem [thread:$0]  %s3097_s3, 8192, %s54_s21, [#allocation8], %s3110_s15, %s3110_s15, %s2740_s24  }
  0x58   :  { %p2663_p12 = scmp.ne.s32.totalorder %s3102_s8, %s2662_s20  ;;  %p2666_p13 = scmp.lt.u32.totalorder %s2662_s20, %s3102_s8 }
  0x5a   :  { %p2668_p0 = pnand %p2666_p13, %p2663_p12 }
  0x5c   :  { %2671 = shalt.err (!%p2668_p0)
}
  0x5d   :  { %s2672_s23 = scalar_lea.vmem %s2885_s28, 1024  ;;  %p2677_p2 = scmp.lt.s32.totalorder %s2885_s28, %s2885_s28 }
  0x5e   :  { %p2673_p1 = scmp.ne.s32.totalorder %s2885_s28, %s2672_s23  ;;  %p2678_p3 = scmp.lt.s32.totalorder %s2672_s23, %s2672_s23 }
  0x60   :  { %p2679_p4 = por %p2678_p3, %p2677_p2 }
  0x62   :  { %p2680_p5 = pnand %p2679_p4, %p2673_p1 }
  0x64   :  { %2683 = shalt.err (!%p2680_p5)
}
  0x65   :  { %89 = dma.hbm_to_vmem [thread:$0]  %s3102_s8, 1024, %s2885_s28, [#allocation11], %s2742_s1, %s2742_s1, %s2743_s30  }
  0x66   :  { %s2748_s21 = smov [#allocation15]   ;;  %s2684_s0 = scalar_lea.hbm %s3107_s13, 2048 }
  0x67   :  { %s113_s29 = sshll.u32 %s2748_s21, 4  ;;  %p2685_p6 = scmp.ne.s32.totalorder %s3107_s13, %s2684_s0  ;;  %s114_s29 = int_to_ptr.vmem [resolvable:$true] %s113_s29 }
  0x68   :  { %p2688_p7 = scmp.lt.u32.totalorder %s2684_s0, %s3107_s13 }
  0x6a   :  { %p2690_p8 = pnand %p2688_p7, %p2685_p6 }
  0x6c   :  { %2693 = shalt.err (!%p2690_p8)
}
  0x6d   :  { %s2694_s27 = scalar_lea.vmem %s114_s29, 2048  ;;  %p2699_p10 = scmp.lt.s32.totalorder %s114_s29, %s114_s29 }
  0x6e   :  { %p2695_p9 = scmp.ne.s32.totalorder %s114_s29, %s2694_s27  ;;  %p2700_p11 = scmp.lt.s32.totalorder %s2694_s27, %s2694_s27 }
  0x70   :  { %p2701_p12 = por %p2700_p11, %p2699_p10 }
  0x72   :  { %p2702_p13 = pnand %p2701_p12, %p2695_p9 }
  0x74   :  { %2705 = shalt.err (!%p2702_p13)
}
  0x75   :  { %119 = dma.hbm_to_vmem [thread:$0]  %s3107_s13, 2048, %s114_s29, [#allocation14], %s2742_s1, %s2742_s1, %s2743_s30  }
  0x76   :  { %2728 = dma.done.wait [#allocation5], 32  }
  0x77   :  { %2729 = vsyncadd [#allocation5], 4294967264 }
  0x78   :  { %2730 = dma.done.wait [#allocation8], 9216  }
  0x79   :  { %2731 = vsyncadd [#allocation8], 4294958080 }
  0x7a   :  { %2732 = dma.done.wait [#allocation11], 4096  }
  0x7b   :  { %2733 = vsyncadd [#allocation11], 4294963200 }
  0x7c   :  { %2734 = dma.done.wait [#allocation14], 5120  }
  0x7d   :  { %2735 = vsyncadd [#allocation14], 4294962176  ;;  %vm514_vm0 = vcmask 516096   ;;  %v2749_v0 = vmov 0.0   ;;  %v143_v1 = vld [vmem:[#allocation7 + $0x8] sm:$0xff]  ;;  %v145_v2 = vld [vmem:[#allocation7 + $0x18] sm:$0xff] }
  0x7e   :  { %230 = vmatprep.mubr.f32.mxu0 %v2749_v0  ;;  %1117 = vst.msk [vmem:[#allocation3 + $0x11] sm:$0x1] %vm514_vm0, %v2749_v0  ;;  %515 = vst.msk [vmem:[#allocation2] sm:$0x1] %vm514_vm0, %v2749_v0  ;;  %v142_v3 = vld [vmem:[#allocation7] sm:$0xff]  ;;  %v2181_v4 = vpack.c.bf16 %v145_v2, %v143_v1  ;;  %v144_v5 = vld [vmem:[#allocation7 + $0x10] sm:$0xff] }
  0x7f   :  { %516 = vst.msk [vmem:[#allocation2 + $0x10] sm:$0x1] %vm514_vm0, %v2749_v0  ;;  %517 = vst.msk [vmem:[#allocation2 + $0x9] sm:$0x1] %vm514_vm0, %v2749_v0  ;;  %v147_v6 = vld [vmem:[#allocation7 + $0x28] sm:$0xff]  ;;  %v149_v7 = vld [vmem:[#allocation7 + $0x38] sm:$0xff]  ;;  %v2183_v8 = vpack.c.bf16 %v144_v5, %v142_v3 }
  0x80   :  { %518 = vst.msk [vmem:[#allocation2 + $0x19] sm:$0x1] %vm514_vm0, %v2749_v0  ;;  %1115 = vst.msk [vmem:[#allocation3] sm:$0x1] %vm514_vm0, %v2749_v0  ;;  %v2185_v9 = vpack.c.bf16 %v149_v7, %v147_v6  ;;  %v146_v10 = vld [vmem:[#allocation7 + $0x20] sm:$0xff]  ;;  %v148_v11 = vld [vmem:[#allocation7 + $0x30] sm:$0xff]  ;;  %2182 = vmatprep.subr.bf16.mxu0 %v2181_v4 }
  0x81   :  { %1116 = vst.msk [vmem:[#allocation3 + $0x18] sm:$0x1] %vm514_vm0, %v2749_v0  ;;  %1118 = vst.msk [vmem:[#allocation3 + $0x29] sm:$0x1] %vm514_vm0, %v2749_v0  ;;  %v238_v12 = vld [vmem:[#allocation9 + $0x8] sm:$0xff]  ;;  %v240_v13 = vld [vmem:[#allocation9 + $0x18] sm:$0xff]  ;;  %2184 = vmatpush1.bf16.msra.mxu0 %v2183_v8  ;;  %v2187_v15 = vpack.c.bf16 %v148_v11, %v146_v10 }
  0x82   :  { %v237_v14 = vld [vmem:[#allocation9] sm:$0xff]  ;;  %v2189_v16 = vpack.c.bf16 %v240_v13, %v238_v12  ;;  %v239_v17 = vld [vmem:[#allocation9 + $0x10] sm:$0xff]  ;;  %v242_v18 = vld [vmem:[#allocation9 + $0x28] sm:$0xff]  ;;  %2186 = vmatprep.subr.bf16.mxu0 %v2185_v9  ;;  %vm162_vm1 = vcmask 261120   ;;  %vm372_vm2 = vcmask 1041408   ;;  %vm552_vm3 = vcmask 517120  }
  0x83   :  { %v244_v19 = vld [vmem:[#allocation9 + $0x38] sm:$0xff]  ;;  %v2191_v20 = vpack.c.bf16 %v239_v17, %v237_v14  ;;  %v241_v22 = vld [vmem:[#allocation9 + $0x20] sm:$0xff]  ;;  %v243_v23 = vld [vmem:[#allocation9 + $0x30] sm:$0xff]  ;;  %vm627_vm4 = vcmask 523264  }
  0x84   :  { %v2193_v21 = vpack.c.bf16 %v244_v19, %v242_v18  ;;  %v246_v24 = vld [vmem:[#allocation9 + $0x48] sm:$0xff]  ;;  %2190 = vmatprep.subr.bf16.mxu1 %v2189_v16  ;;  %v248_v25 = vld [vmem:[#allocation9 + $0x58] sm:$0xff]  ;;  %v2195_v26 = vpack.c.bf16 %v243_v23, %v241_v22  ;;  %v245_v29 = vld [vmem:[#allocation9 + $0x40] sm:$0xff] }
  0x85   :  { %2192 = vmatpush1.bf16.msra.mxu1 %v2191_v20  ;;  %2188 = vmatpush1.bf16.msra.mxu0 %v2187_v15  ;;  %v141_v27 = vld [vmem:[#allocation4] sm:$0x3]  ;;  %v2197_v28 = vpack.c.bf16 %v248_v25, %v246_v24  ;;  %v247_v30 = vld [vmem:[#allocation9 + $0x50] sm:$0xff]  ;;  %v250_v31 = vld [vmem:[#allocation9 + $0x68] sm:$0xff] }
  0x86   :  { %2194 = vmatprep.subr.bf16.mxu1 %v2193_v21  ;;  %v252_v32 = vld [vmem:[#allocation9 + $0x78] sm:$0xff]  ;;  %2254 = vmatprep.subr.bf16.mxu0 %v2189_v16  ;;  %v2199_v33 = vpack.c.bf16 %v247_v30, %v245_v29  ;;  %v249_v35 = vld [vmem:[#allocation9 + $0x60] sm:$0xff]  ;;  %v251_v36 = vld [vmem:[#allocation9 + $0x70] sm:$0xff] }
  0x87   :  { %v2201_v34 = vpack.c.bf16 %v252_v32, %v250_v31  ;;  %v254_v37 = vld [vmem:[#allocation9 + $0x88] sm:$0xff]  ;;  %v256_v38 = vld [vmem:[#allocation9 + $0x98] sm:$0xff]  ;;  %v2203_v39 = vpack.c.bf16 %v251_v36, %v249_v35  ;;  %v253_v41 = vld [vmem:[#allocation9 + $0x80] sm:$0xff] }
  0x88   :  { %1791 = vmatmul.mubr.msk.f32.vlgmr.msra.gmra.mrb[0].mxu0 %vm162_vm1, %v141_v27  ;;  %v2205_v40 = vpack.c.bf16 %v256_v38, %v254_v37  ;;  %v255_v42 = vld [vmem:[#allocation9 + $0x90] sm:$0xff]  ;;  %v258_v43 = vld [vmem:[#allocation9 + $0xa8] sm:$0xff]  ;;  %v260_v44 = vld [vmem:[#allocation9 + $0xb8] sm:$0xff] }
  0x89   :  { %2196 = vmatpush1.bf16.msra.mxu1 %v2195_v26  ;;  %2256 = vmatpush1.bf16.msra.mxu0 %v2191_v20  ;;  %v2207_v45 = vpack.c.bf16 %v255_v42, %v253_v41  ;;  %v2209_v46 = vpack.c.bf16 %v260_v44, %v258_v43  ;;  %v257_v47 = vld [vmem:[#allocation9 + $0xa0] sm:$0xff]  ;;  %v259_v48 = vld [vmem:[#allocation9 + $0xb0] sm:$0xff]  ;;  %v262_v49 = vld [vmem:[#allocation9 + $0xc8] sm:$0xff] }
  0x8a   :  { %2198 = vmatprep.subr.bf16.mxu1 %v2197_v28  ;;  %2258 = vmatprep.subr.bf16.mxu0 %v2193_v21  ;;  %v264_v50 = vld [vmem:[#allocation9 + $0xd8] sm:$0xff]  ;;  %v2211_v51 = vpack.c.bf16 %v259_v48, %v257_v47  ;;  %v261_v53 = vld [vmem:[#allocation9 + $0xc0] sm:$0xff]  ;;  %v263_v54 = vld [vmem:[#allocation9 + $0xd0] sm:$0xff] }
  0x8b   :  { %v2213_v52 = vpack.c.bf16 %v264_v50, %v262_v49  ;;  %v266_v55 = vld [vmem:[#allocation9 + $0xe8] sm:$0xff]  ;;  %v268_v56 = vld [vmem:[#allocation9 + $0xf8] sm:$0xff]  ;;  %v2215_v57 = vpack.c.bf16 %v263_v54, %v261_v53  ;;  %v265_v59 = vld [vmem:[#allocation9 + $0xe0] sm:$0xff] }
  0x8c   :  { %v2217_v58 = vpack.c.bf16 %v268_v56, %v266_v55  ;;  %v267_v60 = vld [vmem:[#allocation9 + $0xf0] sm:$0xff]  ;;  %v270_v61 = vld [vmem:[#allocation9 + $0x108] sm:$0xff]  ;;  %v272_v62 = vld [vmem:[#allocation9 + $0x118] sm:$0xff] }
  0x8d   :  { %2200 = vmatpush1.bf16.msra.mxu1 %v2199_v33  ;;  %2260 = vmatpush1.bf16.msra.mxu0 %v2195_v26  ;;  %v2219_v63 = vpack.c.bf16 %v267_v60, %v265_v59  ;;  %v2221_v0 = vpack.c.bf16 %v272_v62, %v270_v61  ;;  %v269_v1 = vld [vmem:[#allocation9 + $0x100] sm:$0xff]  ;;  %v271_v2 = vld [vmem:[#allocation9 + $0x110] sm:$0xff]  ;;  %v274_v3 = vld [vmem:[#allocation9 + $0x128] sm:$0xff] }
  0x8e   :  { %2202 = vmatprep.subr.bf16.mxu1 %v2201_v34  ;;  %2262 = vmatprep.subr.bf16.mxu0 %v2197_v28  ;;  %v276_v4 = vld [vmem:[#allocation9 + $0x138] sm:$0xff]  ;;  %v2223_v5 = vpack.c.bf16 %v271_v2, %v269_v1  ;;  %v273_v7 = vld [vmem:[#allocation9 + $0x120] sm:$0xff]  ;;  %v275_v8 = vld [vmem:[#allocation9 + $0x130] sm:$0xff] }
  0x8f   :  { %v2225_v6 = vpack.c.bf16 %v276_v4, %v274_v3  ;;  %v278_v9 = vld [vmem:[#allocation9 + $0x148] sm:$0xff]  ;;  %v280_v10 = vld [vmem:[#allocation9 + $0x158] sm:$0xff]  ;;  %v2227_v11 = vpack.c.bf16 %v275_v8, %v273_v7  ;;  %v277_v13 = vld [vmem:[#allocation9 + $0x140] sm:$0xff] }
  0x90   :  { %v2229_v12 = vpack.c.bf16 %v280_v10, %v278_v9  ;;  %v279_v14 = vld [vmem:[#allocation9 + $0x150] sm:$0xff]  ;;  %v282_v15 = vld [vmem:[#allocation9 + $0x168] sm:$0xff]  ;;  %v284_v16 = vld [vmem:[#allocation9 + $0x178] sm:$0xff] }
  0x91   :  { %2204 = vmatpush1.bf16.msra.mxu1 %v2203_v39  ;;  %2264 = vmatpush1.bf16.msra.mxu0 %v2199_v33  ;;  %v2231_v17 = vpack.c.bf16 %v279_v14, %v277_v13  ;;  %v2233_v18 = vpack.c.bf16 %v284_v16, %v282_v15  ;;  %v281_v19 = vld [vmem:[#allocation9 + $0x160] sm:$0xff]  ;;  %v283_v20 = vld [vmem:[#allocation9 + $0x170] sm:$0xff]  ;;  %v286_v21 = vld [vmem:[#allocation9 + $0x188] sm:$0xff] }
  0x92   :  { %2206 = vmatprep.subr.bf16.mxu1 %v2205_v40  ;;  %2266 = vmatprep.subr.bf16.mxu0 %v2201_v34  ;;  %v288_v22 = vld [vmem:[#allocation9 + $0x198] sm:$0xff]  ;;  %v2235_v23 = vpack.c.bf16 %v283_v20, %v281_v19  ;;  %v285_v25 = vld [vmem:[#allocation9 + $0x180] sm:$0xff]  ;;  %v287_v26 = vld [vmem:[#allocation9 + $0x190] sm:$0xff] }
  0x93   :  { %v2237_v24 = vpack.c.bf16 %v288_v22, %v286_v21  ;;  %v290_v27 = vld [vmem:[#allocation9 + $0x1a8] sm:$0xff]  ;;  %v292_v28 = vld [vmem:[#allocation9 + $0x1b8] sm:$0xff]  ;;  %v2239_v29 = vpack.c.bf16 %v287_v26, %v285_v25  ;;  %v289_v31 = vld [vmem:[#allocation9 + $0x1a0] sm:$0xff] }
  0x94   :  { %v2241_v30 = vpack.c.bf16 %v292_v28, %v290_v27  ;;  %v291_v32 = vld [vmem:[#allocation9 + $0x1b0] sm:$0xff]  ;;  %v294_v33 = vld [vmem:[#allocation9 + $0x1c8] sm:$0xff]  ;;  %v296_v34 = vld [vmem:[#allocation9 + $0x1d8] sm:$0xff] }
  0x95   :  { %2208 = vmatpush1.bf16.msra.mxu1 %v2207_v45  ;;  %2268 = vmatpush1.bf16.msra.mxu0 %v2203_v39  ;;  %v2243_v35 = vpack.c.bf16 %v291_v32, %v289_v31  ;;  %v2245_v36 = vpack.c.bf16 %v296_v34, %v294_v33  ;;  %v293_v37 = vld [vmem:[#allocation9 + $0x1c0] sm:$0xff]  ;;  %v295_v38 = vld [vmem:[#allocation9 + $0x1d0] sm:$0xff]  ;;  %v300_v41 = vld [vmem:[#allocation9 + $0x1f8] sm:$0xff] }
  0x96   :  { %2210 = vmatprep.subr.bf16.mxu1 %v2209_v46  ;;  %2270 = vmatprep.subr.bf16.mxu0 %v2205_v40  ;;  %v2247_v39 = vpack.c.bf16 %v295_v38, %v293_v37  ;;  %v298_v40 = vld [vmem:[#allocation9 + $0x1e8] sm:$0xff]  ;;  %v297_v43 = vld [vmem:[#allocation9 + $0x1e0] sm:$0xff]  ;;  %v299_v44 = vld [vmem:[#allocation9 + $0x1f0] sm:$0xff] }
  0x97   :  { %v2249_v42 = vpack.c.bf16 %v300_v41, %v298_v40  ;;  %v150_v49 = vld [vmem:[%s3096_s2] sm:$0x3]  ;;  %v608_v15 = vld [vmem:[#allocation10] sm:$0xff]  ;;  %v2750_v41 = vmov 1966171168  }
  0x98   :  { %v609_v16 = vld [vmem:[#allocation10 + $0x8] sm:$0xff] }
  0x99   :  { %2212 = vmatpush1.bf16.msra.mxu1 %v2211_v51  ;;  %2272 = vmatpush1.bf16.msra.mxu0 %v2207_v45  ;;  %v2251_v45 = vpack.c.bf16 %v299_v44, %v297_v43  ;;  %v620_v19 = vld [vmem:[#allocation10 + $0x48] sm:$0xff] }
  0x9a   :  { %2214 = vmatprep.subr.bf16.mxu1 %v2213_v52  ;;  %2274 = vmatprep.subr.bf16.mxu0 %v2209_v46  ;;  %v152_v46 = vlaneseq  ;;  %v486_v43 = vld [vmem:[%s3098_s4] sm:$0x3]  ;;  %s2751_s4 = smov 64  }
  0x9b   :  { %v500_v44 = vld [vmem:[%s3099_s5] sm:$0x3] }
  0x9c   :  { %v2937_v47 = vshrl.u32 %v152_v46, 7  ;;  %v611_v46 = vld [vmem:[#allocation10 + $0x18] sm:$0xff] }
  0x9d   :  { %2216 = vmatpush1.bf16.msra.mxu1 %v2215_v57  ;;  %2276 = vmatpush1.bf16.msra.mxu0 %v2211_v51 }
  0x9e   :  { %2218 = vmatprep.subr.bf16.mxu1 %v2217_v58  ;;  %2278 = vmatprep.subr.bf16.mxu0 %v2213_v52  ;;  %v2940_v48 = vsub.s32 1, %v2937_v47  ;;  %v2946_v50 = vsub.s32 0, %v2937_v47 }
  0xa0   :  { %v159_v51 = vrot.slane %v150_v49, %v2940_v48  ;;  %v155_v52 = vrot.slane %v150_v49, %v2946_v50  ;;  %v491_v49 = vrot.slane %v486_v43, %v2946_v50 }
  0xa1   :  { %2220 = vmatpush1.bf16.msra.mxu1 %v2219_v63  ;;  %2280 = vmatpush1.bf16.msra.mxu0 %v2215_v57 }
  0xa2   :  { %2222 = vmatprep.subr.bf16.mxu1 %v2221_v0  ;;  %2282 = vmatprep.subr.bf16.mxu0 %v2217_v58 }
  0xa5   :  { %2224 = vmatpush1.bf16.msra.mxu1 %v2223_v5  ;;  %2284 = vmatpush1.bf16.msra.mxu0 %v2219_v63 }
  0xa6   :  { %2226 = vmatprep.subr.bf16.mxu1 %v2225_v6  ;;  %2286 = vmatprep.subr.bf16.mxu0 %v2221_v0 }
  0xa9   :  { %2228 = vmatpush1.bf16.msra.mxu1 %v2227_v11  ;;  %2288 = vmatpush1.bf16.msra.mxu0 %v2223_v5 }
  0xaa   :  { %2230 = vmatprep.subr.bf16.mxu1 %v2229_v12  ;;  %2290 = vmatprep.subr.bf16.mxu0 %v2225_v6 }
  0xad   :  { %2232 = vmatpush1.bf16.msra.mxu1 %v2231_v17  ;;  %2292 = vmatpush1.bf16.msra.mxu0 %v2227_v11 }
  0xae   :  { %2234 = vmatprep.subr.bf16.mxu1 %v2233_v18  ;;  %2294 = vmatprep.subr.bf16.mxu0 %v2229_v12 }
  0xb1   :  { %2236 = vmatpush1.bf16.msra.mxu1 %v2235_v23  ;;  %2296 = vmatpush1.bf16.msra.mxu0 %v2231_v17  ;;  %v619_v17 = vld [vmem:[#allocation10 + $0x40] sm:$0xff] }
  0xb2   :  { %2238 = vmatprep.subr.bf16.mxu1 %v2237_v24  ;;  %2298 = vmatprep.subr.bf16.mxu0 %v2233_v18  ;;  %v2333_v18 = vpack.c.bf16 %v609_v16, %v608_v15  ;;  %v2317_v20 = vpack.c.bf16 %v620_v19, %v619_v17  ;;  %v626_v15 = vld [vmem:[#allocation10 + $0x78] sm:$0xff] }
  0xb5   :  { %2240 = vmatpush1.bf16.msra.mxu1 %v2239_v29  ;;  %2300 = vmatpush1.bf16.msra.mxu0 %v2235_v23 }
  0xb6   :  { %2242 = vmatprep.subr.bf16.mxu1 %v2241_v30  ;;  %2302 = vmatprep.subr.bf16.mxu0 %v2237_v24 }
  0xb9   :  { %2244 = vmatpush1.bf16.msra.mxu1 %v2243_v35  ;;  %2304 = vmatpush1.bf16.msra.mxu0 %v2239_v29 }
  0xba   :  { %2246 = vmatprep.subr.bf16.mxu1 %v2245_v36  ;;  %2306 = vmatprep.subr.bf16.mxu0 %v2241_v30 }
  0xbd   :  { %2248 = vmatpush1.bf16.msra.mxu1 %v2247_v39  ;;  %2308 = vmatpush1.bf16.msra.mxu0 %v2243_v35 }
  0xbe   :  { %2310 = vmatprep.subr.bf16.mxu0 %v2245_v36  ;;  %2250 = vmatprep.subr.bf16.mxu1 %v2249_v42 }
  0xc1   :  { %2312 = vmatpush1.bf16.msra.mxu0 %v2247_v39  ;;  %2252 = vmatpush1.bf16.msra.mxu1 %v2251_v45 }
  0xc2   :  { %2314 = vmatprep.subr.bf16.mxu0 %v2249_v42  ;;  %2334 = vmatprep.subr.bf16.mxu1 %v2333_v18  ;;  %v521_v42 = vunpack.c.l.s4 %v2750_v41 }
  0xc5   :  { %2316 = vmatpush1.bf16.msra.mxu0 %v2251_v45  ;;  %v610_v45 = vld [vmem:[#allocation10 + $0x10] sm:$0xff] }
  0xc6   :  { %2318 = vmatprep.subr.bf16.mxu0 %v2317_v20 }
 0x15b   :  { %v232_v53 = vpop.f32.mrb[0].mxu0 }
 0x15c   :  { %v234_v54 = vpop.f32.mrb[1].mxu0  ;;  %v233_v56 = vadd.f32 %v232_v53, %v155_v52  ;;  %v2337_v52 = vpack.c.bf16 %v611_v46, %v610_v45  ;;  %v621_v53 = vld [vmem:[#allocation10 + $0x50] sm:$0xff] }
 0x15d   :  { %v235_v55 = vadd.f32 %v234_v54, %v159_v51  ;;  %v522_v51 = vunpack.c.0.s8 %v521_v42  ;;  %v622_v54 = vld [vmem:[#allocation10 + $0x58] sm:$0xff]  ;;  %v799_v46 = vld [vmem:[#allocation10 + $0xb0] sm:$0xff] }
 0x15f   :  { %365 = vmatprep.mubr.f32.mxu1 %v235_v55 }
 0x160   :  { %366 = vmatmul.mubr.f32.vlgmr.msra.gmra.mrb[0].mxu1 %v233_v56 }
 0x161   :  { %2336 = vmatpush3.bf16.msra.mxu1 %v2333_v18 }
 0x162   :  { %2338 = vmatprep.subr.bf16.mxu1 %v2337_v52 }
 0x165   :  { %2340 = vmatpush3.bf16.msra.mxu1 %v2337_v52 }
 0x233   :  { %v367_v57 = vpop.f32.mrb[0].mxu1 }
 0x234   :  { %v373_v58 = vsel %vm372_vm2, %v367_v57, 0.0  ;;  %v369_v59 = vpop.f32.mrb[1].mxu1  ;;  %v2321_v57 = vpack.c.bf16 %v622_v54, %v621_v53  ;;  %v893_v53 = vld [vmem:[#allocation12] sm:$0xff]  ;;  %v894_v54 = vld [vmem:[#allocation12 + $0x8] sm:$0xff] }
 0x235   :  { %v374_v60 = vrot.slane %v373_v58, 4  ;;  %v380_v61 = vsel %vm372_vm2, %v369_v59, 0.0 }
 0x236   :  { %v381_v62 = vrot.slane %v380_v61, 4 }
 0x237   :  { %v375_v63 = vadd.f32 %v374_v60, %v373_v58  ;;  %v505_v60 = vrot.slane %v500_v44, %v2946_v50 }
 0x238   :  { %v382_v0 = vadd.f32 %v381_v62, %v380_v61  ;;  %v509_v61 = vrot.slane %v500_v44, %v2940_v48 }
 0x239   :  { %v376_v1 = vrot.slane %v375_v63, 2 }
 0x23a   :  { %v383_v2 = vrot.slane %v382_v0, 2 }
 0x23b   :  { %v377_v3 = vadd.f32 %v376_v1, %v375_v63  ;;  %v612_v63 = vld [vmem:[#allocation10 + $0x20] sm:$0xff] }
 0x23c   :  { %v384_v4 = vadd.f32 %v383_v2, %v382_v0  ;;  %v613_v0 = vld [vmem:[#allocation10 + $0x28] sm:$0xff]  ;;  %v525_v2 = vsub.s32 %v522_v51, %v2937_v47 }
 0x23d   :  { %v378_v5 = vrot.slane %v377_v3, 1 }
 0x23e   :  { %v385_v6 = vrot.slane %v384_v4, 1 }
 0x23f   :  { %v379_v7 = vadd.f32 %v378_v5, %v377_v3  ;;  %v2341_v3 = vpack.c.bf16 %v613_v0, %v612_v63  ;;  %v624_v5 = vld [vmem:[#allocation10 + $0x68] sm:$0xff]  ;;  %v900_v63 = vld [vmem:[#allocation12 + $0x38] sm:$0xff] }
 0x240   :  { %v386_v8 = vadd.f32 %v385_v6, %v384_v4  ;;  %v623_v4 = vld [vmem:[#allocation10 + $0x60] sm:$0xff] }
 0x241   :  { %v387_v9 = vmul.f32 0.03125, %v379_v7  ;;  %v2325_v7 = vpack.c.bf16 %v624_v5, %v623_v4  ;;  %2342 = vmatprep.subr.bf16.mxu1 %v2341_v3  ;;  %v1798_v5 = vld [vmem:[%s3101_s7] ss:$0 sm:$0xff] }
 0x242   :  { %v388_v10 = vmul.f32 0.03125, %v386_v8  ;;  %2344 = vmatpush3.bf16.msra.mxu1 %v2341_v3 }
 0x243   :  { %v389_v11 = vsub.f32 %v233_v56, %v387_v9  ;;  %v495_v56 = vrot.slane %v486_v43, %v2940_v48  ;;  %v798_v43 = vld [vmem:[#allocation10 + $0xa8] sm:$0xff] }
 0x244   :  { %v390_v12 = vsub.f32 %v235_v55, %v388_v10  ;;  %v614_v10 = vld [vmem:[#allocation10 + $0x30] sm:$0xff] }
 0x245   :  { %v391_v14 = vmul.f32 %v389_v11, %v389_v11 }
 0x246   :  { %v392_v13 = vmul.f32 %v390_v12, %v390_v12 }
 0x248   :  { %457 = vmatprep.mubr.f32.mxu0 %v392_v13 }
 0x249   :  { %458 = vmatmul.mubr.f32.vlgmr.msra.gmra.mrb[2].mxu0 %v391_v14 }
 0x24a   :  { %2320 = vmatpush3.bf16.msra.mxu0 %v2317_v20 }
 0x24b   :  { %2322 = vmatprep.subr.bf16.mxu0 %v2321_v57 }
 0x24e   :  { %2324 = vmatpush3.bf16.msra.mxu0 %v2321_v57  ;;  %v896_v57 = vld [vmem:[#allocation12 + $0x18] sm:$0xff] }
 0x24f   :  { %2326 = vmatprep.subr.bf16.mxu0 %v2325_v7 }
 0x252   :  { %2328 = vmatpush3.bf16.msra.mxu0 %v2325_v7 }
 0x31c   :  { %v459_v21 = vpop.f32.mrb[2].mxu0 }
 0x31d   :  { %v464_v22 = vsel %vm372_vm2, %v459_v21, 0.0  ;;  %v461_v23 = vpop.f32.mrb[3].mxu0 }
 0x31e   :  { %v465_v24 = vrot.slane %v464_v22, 4  ;;  %v471_v25 = vsel %vm372_vm2, %v461_v23, 0.0  ;;  %v794_v23 = vld [vmem:[#allocation10 + $0x88] sm:$0xff] }
 0x31f   :  { %v472_v26 = vrot.slane %v471_v25, 4 }
 0x320   :  { %v466_v27 = vadd.f32 %v465_v24, %v464_v22  ;;  %v793_v22 = vld [vmem:[#allocation10 + $0x80] sm:$0xff] }
 0x321   :  { %v473_v28 = vadd.f32 %v472_v26, %v471_v25  ;;  %v2349_v26 = vpack.c.bf16 %v794_v23, %v793_v22 }
 0x322   :  { %v467_v29 = vrot.slane %v466_v27, 2 }
 0x323   :  { %v474_v30 = vrot.slane %v473_v28, 2 }
 0x324   :  { %v468_v31 = vadd.f32 %v467_v29, %v466_v27 }
 0x325   :  { %v475_v32 = vadd.f32 %v474_v30, %v473_v28 }
 0x326   :  { %v469_v33 = vrot.slane %v468_v31, 1 }
 0x327   :  { %v476_v34 = vrot.slane %v475_v32, 1 }
 0x328   :  { %v470_v35 = vadd.f32 %v469_v33, %v468_v31 }
 0x329   :  { %v477_v36 = vadd.f32 %v476_v34, %v475_v32 }
 0x32a   :  { %v478_v37 = vmul.f32 0.03125, %v470_v35  ;;  %v795_v35 = vld [vmem:[#allocation10 + $0x90] sm:$0xff] }
 0x32b   :  { %v479_v38 = vmul.f32 0.03125, %v477_v36  ;;  %v796_v36 = vld [vmem:[#allocation10 + $0x98] sm:$0xff] }
 0x32c   :  { %v480_v39 = vadd.f32 1e-05, %v478_v37 }
 0x32d   :  { %v481_v40 = vadd.f32 1e-05, %v479_v38 }
 0x32e   :  { %2536 = vrsqrt.f32 %v480_v39  ;;  %v2353_v39 = vpack.c.bf16 %v796_v36, %v795_v35  ;;  %v1223_v36 = vld [vmem:[#allocation13 + $0x78] sm:$0xff] }
 0x32f   :  { %2538 = vrsqrt.f32 %v481_v40  ;;  %v797_v40 = vld [vmem:[#allocation10 + $0xa0] sm:$0xff] }
 0x330   :  { %v2357_v45 = vpack.c.bf16 %v798_v43, %v797_v40  ;;  %v1549_v43 = vld [vmem:[#allocation15 + $0x10] sm:$0xff] }
 0x338   :  { %v2537_v55 = vpop.eup %2536 }
 0x339   :  { %v2539_v58 = vpop.eup %2538  ;;  %v484_v59 = vmul.f32 %v2537_v55, %v389_v11  ;;  %v615_v11 = vld [vmem:[#allocation10 + $0x38] sm:$0xff]  ;;  %v895_v55 = vld [vmem:[#allocation12 + $0x10] sm:$0xff] }
 0x33a   :  { %v485_v62 = vmul.f32 %v2539_v58, %v390_v12  ;;  %v625_v12 = vld [vmem:[#allocation10 + $0x70] sm:$0xff]  ;;  %v2345_v14 = vpack.c.bf16 %v615_v11, %v614_v10  ;;  %v2369_v58 = vpack.c.bf16 %v896_v57, %v895_v55 }
 0x33b   :  { %v498_v1 = vmul.f32 %v491_v49, %v484_v59  ;;  %v2329_v17 = vpack.c.bf16 %v626_v15, %v625_v12  ;;  %v800_v49 = vld [vmem:[#allocation10 + $0xb8] sm:$0xff]  ;;  %v897_v59 = vld [vmem:[#allocation12 + $0x20] sm:$0xff] }
 0x33c   :  { %v499_v6 = vmul.f32 %v495_v56, %v485_v62  ;;  %2346 = vmatprep.subr.bf16.mxu1 %v2345_v14  ;;  %v2361_v51 = vpack.c.bf16 %v800_v49, %v799_v46  ;;  %v2365_v56 = vpack.c.bf16 %v894_v54, %v893_v53  ;;  %v899_v62 = vld [vmem:[#allocation12 + $0x30] sm:$0xff]  ;;  %v1551_v49 = vld [vmem:[#allocation15 + $0x20] sm:$0xff]  ;;  %v1554_v54 = vld [vmem:[#allocation15 + $0x38] sm:$0xff] }
 0x33d   :  { %v512_v8 = vadd.f32 %v505_v60, %v498_v1  ;;  %2330 = vmatprep.subr.bf16.mxu0 %v2329_v17  ;;  %2348 = vmatpush3.bf16.msra.mxu1 %v2345_v14  ;;  %v898_v60 = vld [vmem:[#allocation12 + $0x28] sm:$0xff]  ;;  %v2377_v0 = vpack.c.bf16 %v900_v63, %v899_v62  ;;  %v1553_v53 = vld [vmem:[#allocation15 + $0x30] sm:$0xff] }
 0x33e   :  { %v513_v9 = vadd.f32 %v509_v61, %v499_v6  ;;  %2332 = vmatpush3.bf16.msra.mxu0 %v2329_v17  ;;  %2350 = vmatprep.subr.bf16.mxu1 %v2349_v26  ;;  %v2373_v61 = vpack.c.bf16 %v898_v60, %v897_v59  ;;  %v3014_v55 = vpack.c.bf16 %v1554_v54, %v1553_v53  ;;  %v1209_v54 = vld [vmem:[#allocation13 + $0x30] sm:$0xff] }
 0x33f   :  { %v526_v13 = vrot.slane %v512_v8, %v525_v2  ;;  %2366 = vmatprep.subr.bf16.mxu0 %v2365_v56 }
 0x340   :  { %v570_v16 = vrot.slane %v513_v9, %v525_v2 }
 0x341   :  { %v534_v18 = vrot.slane %v526_v13, %v525_v2  ;;  %v527_v19 = vcombine.high %v526_v13, %v526_v13 }
 0x342   :  { %v578_v20 = vrot.slane %v570_v16, %v525_v2  ;;  %v571_v21 = vcombine.high %v570_v16, %v570_v16 }
 0x343   :  { %v545_v24 = vrot.slane %v534_v18, %v2946_v50  ;;  %v541_v25 = vrot.slane %v527_v19, %v525_v2 }
 0x344   :  { %v589_v27 = vrot.slane %v578_v20, %v2946_v50  ;;  %v585_v28 = vrot.slane %v571_v21, %v525_v2 }
 0x345   :  { %555 = vrot.lane.b32.xlu0 %v545_v24, %s2751_s4  ;;  %553 = vst.msk [vmem:[#allocation2 + $0x1] sm:$0x3] %vm552_vm3, %v545_v24  ;;  %v549_v29 = vrot.slane %v541_v25, %v2946_v50 }
 0x346   :  { %596 = vst.msk [vmem:[#allocation2 + $0x5] sm:$0x3] %vm552_vm3, %v589_v27  ;;  %v593_v30 = vrot.slane %v585_v28, %v2946_v50 }
 0x347   :  { %557 = vrot.lane.b32.xlu1 %v549_v29, %s2751_s4  ;;  %554 = vst.msk [vmem:[#allocation2 + $0x11] sm:$0x3] %vm552_vm3, %v549_v29  ;;  %v1218_v29 = vld [vmem:[#allocation13 + $0x50] sm:$0xff] }
 0x348   :  { %597 = vst.msk [vmem:[#allocation2 + $0x15] sm:$0x3] %vm552_vm3, %v593_v30 }
 0x349   :  { %598 = vrot.lane.b32.xlu0 %v589_v27, %s2751_s4  ;;  %v1217_v27 = vld [vmem:[#allocation13 + $0x48] sm:$0xff] }
 0x34b   :  { %600 = vrot.lane.b32.xlu1 %v593_v30, %s2751_s4  ;;  %v1219_v30 = vld [vmem:[#allocation13 + $0x58] sm:$0xff] }
 0x3b7   :  { %v556_v31 = vpop.permute.xlu0 %555 }
 0x3b8   :  { %561 = vst.msk [vmem:[#allocation2 + $0x3] sm:$0x3] %vm552_vm3, %v556_v31  ;;  %v2401_v31 = vpack.c.bf16 %v1219_v30, %v1218_v29 }
 0x3b9   :  { %v558_v32 = vpop.permute.xlu1 %557 }
 0x3ba   :  { %562 = vst.msk [vmem:[#allocation2 + $0x13] sm:$0x3] %vm552_vm3, %v558_v32  ;;  %v1220_v32 = vld [vmem:[#allocation13 + $0x60] sm:$0xff] }
 0x3bb   :  { %v599_v33 = vpop.permute.xlu0 %598 }
 0x3bc   :  { %604 = vst.msk [vmem:[#allocation2 + $0x7] sm:$0x3] %vm552_vm3, %v599_v33  ;;  %v1221_v33 = vld [vmem:[#allocation13 + $0x68] sm:$0xff] }
 0x3bd   :  { %v601_v34 = vpop.permute.xlu1 %600  ;;  %v2405_v35 = vpack.c.bf16 %v1221_v33, %v1220_v32 }
 0x3be   :  { %605 = vst.msk [vmem:[#allocation2 + $0x17] sm:$0x3] %vm552_vm3, %v601_v34  ;;  %v1222_v34 = vld [vmem:[#allocation13 + $0x70] sm:$0xff] }
 0x3c3   :  { %v616_v37 = vld [vmem:[#allocation2 + $0x1] sm:$0xff] }
 0x3c4   :  { %v606_v38 = vld [vmem:[#allocation2] sm:$0xff]  ;;  %1960 = vmatprep.mubr.msk.f32.mxu0 %vm627_vm4, %v616_v37  ;;  %v2409_v37 = vpack.c.bf16 %v1223_v36, %v1222_v34 }
 0x3c5   :  { %1979 = vmatprep.mubr.msk.f32.mxu1 %vm627_vm4, %v606_v38  ;;  %v617_v41 = vld [vmem:[#allocation2 + $0x11] sm:$0xff]  ;;  %v790_v44 = vld [vmem:[#allocation2 + $0x2] sm:$0xff] }
 0x3c6   :  { %v607_v42 = vld [vmem:[#allocation2 + $0x10] sm:$0xff]  ;;  %1961 = vmatmul.mubr.msk.f32.vlgmr.msra.gmra.mrb[4].mxu0 %vm627_vm4, %v617_v41 }
 0x3c7   :  { %1980 = vmatmul.mubr.msk.f32.vlgmr.msra.gmra.mrb[2].mxu1 %vm627_vm4, %v607_v42  ;;  %v791_v52 = vld [vmem:[#allocation2 + $0x12] sm:$0xff]  ;;  %2368 = vmatpush3.bf16.msra.mxu0 %v2365_v56  ;;  %v1548_v42 = vld [vmem:[#allocation15 + $0x8] sm:$0xff] }
 0x3c8   :  { %2352 = vmatpush3.bf16.msra.mxu1 %v2349_v26  ;;  %1998 = vmatprep.mubr.msk.f32.mxu1 %vm627_vm4, %v790_v44  ;;  %v1216_v26 = vld [vmem:[#allocation13 + $0x40] sm:$0xff] }
 0x3c9   :  { %2354 = vmatprep.subr.bf16.mxu1 %v2353_v39  ;;  %2370 = vmatprep.subr.bf16.mxu0 %v2369_v58  ;;  %v2397_v28 = vpack.c.bf16 %v1217_v27, %v1216_v26  ;;  %v1203_v38 = vld [vmem:[#allocation13] sm:$0xff] }
 0x3ca   :  { %v1547_v41 = vld [vmem:[#allocation15] sm:$0xff] }
 0x3cb   :  { %2372 = vmatpush3.bf16.msra.mxu0 %v2369_v58  ;;  %v3003_v44 = vpack.c.bf16 %v1548_v42, %v1547_v41 }
 0x3cc   :  { %2356 = vmatpush3.bf16.msra.mxu1 %v2353_v39  ;;  %2374 = vmatprep.subr.bf16.mxu0 %v2373_v61  ;;  %v1204_v39 = vld [vmem:[#allocation13 + $0x8] sm:$0xff] }
 0x3cd   :  { %2358 = vmatprep.subr.bf16.mxu1 %v2357_v45  ;;  %v3000_v40 = vpack.c.bf16 %v1204_v39, %v1203_v38 }
 0x3cf   :  { %2376 = vmatpush3.bf16.msra.mxu0 %v2373_v61 }
 0x3d0   :  { %2360 = vmatpush3.bf16.msra.mxu1 %v2357_v45  ;;  %2378 = vmatprep.subr.bf16.mxu0 %v2377_v0  ;;  %v1550_v45 = vld [vmem:[#allocation15 + $0x18] sm:$0xff] }
 0x3d1   :  { %2362 = vmatprep.subr.bf16.mxu1 %v2361_v51  ;;  %v3005_v46 = vpack.c.bf16 %v1550_v45, %v1549_v43  ;;  %v1207_v43 = vld [vmem:[#allocation13 + $0x20] sm:$0xff]  ;;  %v1208_v45 = vld [vmem:[#allocation13 + $0x28] sm:$0xff] }
 0x3d3   :  { %2380 = vmatpush3.bf16.msra.mxu0 %v2377_v0 }
 0x3d4   :  { %2364 = vmatpush3.bf16.msra.mxu1 %v2361_v51  ;;  %2382 = vmatprep.subr.bf16.mxu0 %v2365_v56  ;;  %v1552_v51 = vld [vmem:[#allocation15 + $0x28] sm:$0xff] }
 0x3d5   :  { %2446 = vmatprep.subr.bf16.mxu1 %v3003_v44 }
 0x3d7   :  { %1999 = vmatmul.mubr.msk.f32.vlgmr.msra.gmra.mrb[2].mxu1 %vm627_vm4, %v791_v52  ;;  %v3010_v52 = vpack.c.bf16 %v1552_v51, %v1551_v49  ;;  %v2421_v51 = vpack.c.bf16 %v1208_v45, %v1207_v43 }
 0x3d8   :  { %2448 = vmatpush3.bf16.msra.mxu1 %v3003_v44 }
 0x3d9   :  { %2450 = vmatprep.subr.bf16.mxu1 %v3005_v46 }
 0x3dc   :  { %2452 = vmatpush3.bf16.msra.mxu1 %v3005_v46 }
 0x3dd   :  { %2454 = vmatprep.subr.bf16.mxu1 %v3010_v52 }
 0x3e0   :  { %2456 = vmatpush3.bf16.msra.mxu1 %v3010_v52 }
 0x3e1   :  { %2458 = vmatprep.subr.bf16.mxu1 %v3014_v55 }
 0x3e4   :  { %2460 = vmatpush3.bf16.msra.mxu1 %v3014_v55 }
 0x499   :  { %v1962_v1 = vpop.f32.mrb[4].mxu0 }
 0x49a   :  { %v700_v2 = vpop.f32.mrb[5].mxu0 }
 0x4aa   :  { %v2000_v3 = vpop.f32.mrb[2].mxu1 }
 0x4ab   :  { %v2509_v4 = vadd.f32 %v2000_v3, %v1962_v1  ;;  %v873_v6 = vpop.f32.mrb[3].mxu1 }
 0x4ac   :  { %v2510_v7 = vadd.f32 %v873_v6, %v700_v2  ;;  %v1803_v6 = vld [vmem:[%s3103_s9] ss:$0 sm:$0xff] }
 0x4ad   :  { %v892_v9 = vadd.f32 %v2509_v4, %v1798_v5 }
 0x4ae   :  { %v891_v8 = vadd.f32 %v2510_v7, %v1798_v5 }
 0x4b0   :  { %2017 = vmatprep.mubr.msk.f32.mxu0 %vm627_vm4, %v891_v8 }
 0x4b1   :  { %2018 = vmatmul.mubr.msk.f32.vlgmr.msra.gmra.mrb[6].mxu0 %vm627_vm4, %v892_v9 }
 0x4b2   :  { %2384 = vmatpush3.bf16.msra.mxu0 %v2365_v56 }
 0x4b3   :  { %2386 = vmatprep.subr.bf16.mxu0 %v2369_v58 }
 0x4b6   :  { %2388 = vmatpush3.bf16.msra.mxu0 %v2369_v58 }
 0x4b7   :  { %2390 = vmatprep.subr.bf16.mxu0 %v2373_v61 }
 0x4ba   :  { %2392 = vmatpush3.bf16.msra.mxu0 %v2373_v61 }
 0x4bb   :  { %2394 = vmatprep.subr.bf16.mxu0 %v2377_v0 }
 0x4be   :  { %2396 = vmatpush3.bf16.msra.mxu0 %v2377_v0 }
 0x4bf   :  { %2398 = vmatprep.subr.bf16.mxu0 %v2397_v28 }
 0x584   :  { %v2019_v10 = vpop.f32.mrb[6].mxu0 }
 0x585   :  { %v983_v11 = vsel %vm627_vm4, %v2019_v10, 0.0  ;;  %v973_v12 = vpop.f32.mrb[7].mxu0 }
 0x586   :  { %v982_v13 = vsel %vm627_vm4, %v973_v12, 0.0 }
 0x587   :  { %v984_v14 = vadd.f32 %v983_v11, %v982_v13 }
 0x589   :  { %v985_v15 = vrot.slane %v984_v14, 4 }
 0x58b   :  { %v986_v16 = vadd.f32 %v985_v15, %v984_v14  ;;  %v1141_v14 = vsub.s32 2, %v2937_v47  ;;  %v1151_v15 = vsub.s32 3, %v2937_v47 }
 0x58d   :  { %v987_v17 = vrot.slane %v986_v16, 2 }
 0x58f   :  { %v988_v18 = vadd.f32 %v987_v17, %v986_v16  ;;  %v1161_v16 = vsub.s32 4, %v2937_v47  ;;  %v1171_v17 = vsub.s32 5, %v2937_v47 }
 0x591   :  { %v989_v19 = vrot.slane %v988_v18, 1 }
 0x593   :  { %v990_v20 = vadd.f32 %v989_v19, %v988_v18  ;;  %v1181_v18 = vsub.s32 6, %v2937_v47  ;;  %v1191_v19 = vsub.s32 7, %v2937_v47 }
 0x595   :  { %v991_v21 = vmul.f32 0.0078125, %v990_v20 }
 0x597   :  { %v2990_v22 = vsub.f32 %v892_v9, %v991_v21  ;;  %v2992_v23 = vsub.f32 %v891_v8, %v991_v21  ;;  %v1804_v9 = vld [vmem:[%s3104_s10] ss:$0 sm:$0xff] }
 0x599   :  { %v994_v24 = vmul.f32 %v2992_v23, %v2992_v23  ;;  %v995_v25 = vmul.f32 %v2990_v22, %v2990_v22 }
 0x59b   :  { %2036 = vmatprep.mubr.msk.f32.mxu0 %vm627_vm4, %v994_v24 }
 0x59c   :  { %2037 = vmatmul.mubr.msk.f32.vlgmr.msra.gmra.mrb[8].mxu0 %vm627_vm4, %v995_v25 }
 0x59d   :  { %2400 = vmatpush3.bf16.msra.mxu0 %v2397_v28 }
 0x59e   :  { %2402 = vmatprep.subr.bf16.mxu0 %v2401_v31 }
 0x5a1   :  { %2404 = vmatpush3.bf16.msra.mxu0 %v2401_v31 }
 0x5a2   :  { %2406 = vmatprep.subr.bf16.mxu0 %v2405_v35 }
 0x5a5   :  { %2408 = vmatpush3.bf16.msra.mxu0 %v2405_v35 }
 0x5a6   :  { %2410 = vmatprep.subr.bf16.mxu0 %v2409_v37 }
 0x5a9   :  { %2412 = vmatpush3.bf16.msra.mxu0 %v2409_v37 }
 0x5aa   :  { %2414 = vmatprep.subr.bf16.mxu0 %v3000_v40 }
 0x66f   :  { %v2038_v56 = vpop.f32.mrb[8].mxu0 }
 0x670   :  { %v1078_v57 = vsel %vm627_vm4, %v2038_v56, 0.0  ;;  %v1068_v58 = vpop.f32.mrb[9].mxu0  ;;  %v1210_v56 = vld [vmem:[#allocation13 + $0x38] sm:$0xff] }
 0x671   :  { %v1077_v59 = vsel %vm627_vm4, %v1068_v58, 0.0  ;;  %v2425_v58 = vpack.c.bf16 %v1210_v56, %v1209_v54 }
 0x672   :  { %v1079_v60 = vadd.f32 %v1078_v57, %v1077_v59  ;;  %v1423_v59 = vld [vmem:[#allocation13 + $0x80] sm:$0xff] }
 0x674   :  { %v1080_v61 = vrot.slane %v1079_v60, 4 }
 0x676   :  { %v1081_v62 = vadd.f32 %v1080_v61, %v1079_v60  ;;  %v1424_v60 = vld [vmem:[#allocation13 + $0x88] sm:$0xff]  ;;  %v1425_v61 = vld [vmem:[#allocation13 + $0x90] sm:$0xff] }
 0x678   :  { %v1082_v63 = vrot.slane %v1081_v62, 2 }
 0x67a   :  { %v1083_v0 = vadd.f32 %v1082_v63, %v1081_v62  ;;  %v1426_v62 = vld [vmem:[#allocation13 + $0x98] sm:$0xff] }
 0x67b   :  { %v2433_v63 = vpack.c.bf16 %v1426_v62, %v1425_v61 }
 0x67c   :  { %v1084_v1 = vrot.slane %v1083_v0, 1 }
 0x67e   :  { %v1085_v2 = vadd.f32 %v1084_v1, %v1083_v0  ;;  %v1427_v1 = vld [vmem:[#allocation13 + $0xa0] sm:$0xff] }
 0x680   :  { %v1086_v3 = vmul.f32 0.0078125, %v1085_v2  ;;  %v1428_v2 = vld [vmem:[#allocation13 + $0xa8] sm:$0xff] }
 0x682   :  { %v1087_v4 = vadd.f32 1e-05, %v1086_v3 }
 0x684   :  { %2540 = vrsqrt.f32 %v1087_v4  ;;  %v2437_v4 = vpack.c.bf16 %v1428_v2, %v1427_v1 }
 0x68e   :  { %v2541_v5 = vpop.eup %2540 }
 0x68f   :  { %v1089_v7 = vmul.f32 %v2541_v5, %v2992_v23  ;;  %v1090_v8 = vmul.f32 %v2541_v5, %v2990_v22 }
 0x691   :  { %v1098_v10 = vmul.f32 %v1803_v6, %v1089_v7  ;;  %v1099_v11 = vmul.f32 %v1803_v6, %v1090_v8  ;;  %v1429_v6 = vld [vmem:[#allocation13 + $0xb0] sm:$0xff]  ;;  %v1430_v7 = vld [vmem:[#allocation13 + $0xb8] sm:$0xff] }
 0x693   :  { %v1107_v12 = vadd.f32 %v1804_v9, %v1098_v10  ;;  %v1108_v13 = vadd.f32 %v1804_v9, %v1099_v11  ;;  %v2441_v9 = vpack.c.bf16 %v1430_v7, %v1429_v6 }
 0x695   :  { %vm1109_vm5 = vcmp.ge.f32.partialorder %v1107_v12, 0.0  ;;  %vm1110_vm6 = vcmp.ge.f32.partialorder %v1108_v13, 0.0  ;;  %v1111_v20 = vmul.f32 0.2, %v1107_v12  ;;  %v1112_v21 = vmul.f32 0.2, %v1108_v13 }
 0x697   :  { %v1113_v22 = vsel %vm1109_vm5, %v1107_v12, %v1111_v20  ;;  %v1114_v23 = vsel %vm1110_vm6, %v1108_v13, %v1112_v21  ;;  %v1555_v13 = vld [vmem:[#allocation15 + $0x40] sm:$0xff]  ;;  %v1560_v20 = vld [vmem:[#allocation15 + $0x68] sm:$0xff]  ;;  %v1561_v21 = vld [vmem:[#allocation15 + $0x70] sm:$0xff] }
 0x698   :  { %v1122_v24 = vrot.slane %v1113_v22, %v2946_v50  ;;  %v1132_v25 = vrot.slane %v1113_v22, %v2940_v48  ;;  %v1142_v26 = vrot.slane %v1113_v22, %v1141_v14  ;;  %v1152_v27 = vrot.slane %v1113_v22, %v1151_v15 }
 0x699   :  { %v1162_v28 = vrot.slane %v1113_v22, %v1161_v16  ;;  %v1172_v29 = vrot.slane %v1113_v22, %v1171_v17  ;;  %v1182_v30 = vrot.slane %v1113_v22, %v1181_v18  ;;  %v1192_v31 = vrot.slane %v1113_v22, %v1191_v19 }
 0x69a   :  { %1127 = vst.msk [vmem:[#allocation3 + $0x1] sm:$0x3] %vm552_vm3, %v1122_v24  ;;  %1137 = vst.msk [vmem:[#allocation3 + $0x3] sm:$0x3] %vm552_vm3, %v1132_v25  ;;  %v1126_v47 = vrot.slane %v1114_v23, %v2946_v50  ;;  %v1136_v32 = vrot.slane %v1114_v23, %v2940_v48  ;;  %v1146_v33 = vrot.slane %v1114_v23, %v1141_v14  ;;  %v1205_v48 = vld [vmem:[#allocation13 + $0x10] sm:$0xff]  ;;  %v1206_v50 = vld [vmem:[#allocation13 + $0x18] sm:$0xff] }
 0x69b   :  { %1147 = vst.msk [vmem:[#allocation3 + $0x5] sm:$0x3] %vm552_vm3, %v1142_v26  ;;  %1157 = vst.msk [vmem:[#allocation3 + $0x7] sm:$0x3] %vm552_vm3, %v1152_v27  ;;  %v1156_v34 = vrot.slane %v1114_v23, %v1151_v15  ;;  %v1166_v35 = vrot.slane %v1114_v23, %v1161_v16  ;;  %v1176_v36 = vrot.slane %v1114_v23, %v1171_v17  ;;  %v1556_v14 = vld [vmem:[#allocation15 + $0x48] sm:$0xff]  ;;  %v1557_v16 = vld [vmem:[#allocation15 + $0x50] sm:$0xff] }
 0x69c   :  { %1167 = vst.msk [vmem:[#allocation3 + $0x9] sm:$0x3] %vm552_vm3, %v1162_v28  ;;  %1177 = vst.msk [vmem:[#allocation3 + $0xb] sm:$0x3] %vm552_vm3, %v1172_v29  ;;  %v1186_v37 = vrot.slane %v1114_v23, %v1181_v18  ;;  %v1196_v38 = vrot.slane %v1114_v23, %v1191_v19  ;;  %v2417_v41 = vpack.c.bf16 %v1206_v50, %v1205_v48  ;;  %v1558_v17 = vld [vmem:[#allocation15 + $0x58] sm:$0xff]  ;;  %v1559_v19 = vld [vmem:[#allocation15 + $0x60] sm:$0xff] }
 0x69d   :  { %1187 = vst.msk [vmem:[#allocation3 + $0xd] sm:$0x3] %vm552_vm3, %v1182_v30  ;;  %1197 = vst.msk [vmem:[#allocation3 + $0xf] sm:$0x3] %vm552_vm3, %v1192_v31  ;;  %v2461_v15 = vpack.c.bf16 %v1556_v14, %v1555_v13  ;;  %v2465_v18 = vpack.c.bf16 %v1558_v17, %v1557_v16  ;;  %v2469_v22 = vpack.c.bf16 %v1560_v20, %v1559_v19  ;;  %v1562_v23 = vld [vmem:[#allocation15 + $0x78] sm:$0xff] }
 0x69e   :  { %1128 = vst.msk [vmem:[#allocation3 + $0x19] sm:$0x3] %vm552_vm3, %v1126_v47  ;;  %1138 = vst.msk [vmem:[#allocation3 + $0x1b] sm:$0x3] %vm552_vm3, %v1136_v32  ;;  %v2473_v24 = vpack.c.bf16 %v1562_v23, %v1561_v21  ;;  %v1817_v25 = vld [vmem:[%s3106_s12] ss:$0 sm:$0xff] }
 0x69f   :  { %1148 = vst.msk [vmem:[#allocation3 + $0x1d] sm:$0x3] %vm552_vm3, %v1146_v33  ;;  %1158 = vst.msk [vmem:[#allocation3 + $0x1f] sm:$0x3] %vm552_vm3, %v1156_v34  ;;  %2462 = vmatprep.subr.bf16.mxu1 %v2461_v15  ;;  %s2752_s12 = smov [#allocation16]  }
 0x6a0   :  { %1168 = vst.msk [vmem:[#allocation3 + $0x21] sm:$0x3] %vm552_vm3, %v1166_v35  ;;  %1178 = vst.msk [vmem:[#allocation3 + $0x23] sm:$0x3] %vm552_vm3, %v1176_v36  ;;  %2464 = vmatpush3.bf16.msra.mxu1 %v2461_v15  ;;  %s1776_s21 = sshll.u32 %s2752_s12, 4  ;;  %s1777_s21 = int_to_ptr.vmem [resolvable:$true] %s1776_s21 }
 0x6a1   :  { %1188 = vst.msk [vmem:[#allocation3 + $0x25] sm:$0x3] %vm552_vm3, %v1186_v37  ;;  %1198 = vst.msk [vmem:[#allocation3 + $0x27] sm:$0x3] %vm552_vm3, %v1196_v38  ;;  %2466 = vmatprep.subr.bf16.mxu1 %v2465_v18  ;;  %s2706_s29 = scalar_lea.vmem %s1777_s21, 512  ;;  %p2711_p1 = scmp.lt.s32.totalorder %s1777_s21, %s1777_s21 }
 0x6a2   :  { %v1211_v39 = vld [vmem:[#allocation3 + $0x1] sm:$0xff]  ;;  %p2707_p0 = scmp.ne.s32.totalorder %s1777_s21, %s2706_s29  ;;  %p2712_p2 = scmp.lt.s32.totalorder %s2706_s29, %s2706_s29 }
 0x6a3   :  { %2055 = vmatprep.mubr.msk.f32.mxu0 %vm627_vm4, %v1211_v39  ;;  %v1199_v57 = vld [vmem:[#allocation3] sm:$0xff] }
 0x6a4   :  { %v1212_v42 = vld [vmem:[#allocation3 + $0x9] sm:$0xff]  ;;  %2468 = vmatpush3.bf16.msra.mxu1 %v2465_v18  ;;  %p2713_p3 = por %p2712_p2, %p2711_p1 }
 0x6a5   :  { %2056 = vmatmul.mubr.msk.f32.vlgmr.msra.gmra.mrb[10].mxu0 %vm627_vm4, %v1212_v42  ;;  %v1200_v0 = vld [vmem:[#allocation3 + $0x8] sm:$0xff]  ;;  %2470 = vmatprep.subr.bf16.mxu1 %v2469_v22 }
 0x6a6   :  { %v1213_v49 = vld [vmem:[#allocation3 + $0x19] sm:$0xff]  ;;  %2416 = vmatpush3.bf16.msra.mxu0 %v3000_v40  ;;  %v2429_v40 = vpack.c.bf16 %v1424_v60, %v1423_v59  ;;  %v1418_v8 = vld [vmem:[#allocation3 + $0x2] sm:$0xff]  ;;  %v1419_v10 = vld [vmem:[#allocation3 + $0xa] sm:$0xff]  ;;  %p2714_p4 = pnand %p2713_p3, %p2707_p0 }
 0x6a7   :  { %2058 = vmatprep.mubr.msk.f32.mxu0 %vm627_vm4, %v1213_v49  ;;  %2418 = vmatprep.subr.bf16.mxu0 %v2417_v41  ;;  %v1201_v3 = vld [vmem:[#allocation3 + $0x18] sm:$0xff] }
 0x6a8   :  { %v1214_v53 = vld [vmem:[#allocation3 + $0x21] sm:$0xff]  ;;  %2472 = vmatpush3.bf16.msra.mxu1 %v2469_v22 }
 0x6a9   :  { %2059 = vmatmul.mubr.msk.f32.gmra.mrb[12].mxu0 %vm627_vm4, %v1214_v53  ;;  %v1202_v5 = vld [vmem:[#allocation3 + $0x20] sm:$0xff]  ;;  %2474 = vmatprep.subr.bf16.mxu1 %v2473_v24 }
 0x6aa   :  { %2420 = vmatpush3.bf16.msra.mxu0 %v2417_v41  ;;  %2077 = vmatprep.mubr.msk.f32.mxu0 %vm627_vm4, %v1199_v57  ;;  %v1420_v11 = vld [vmem:[#allocation3 + $0x1a] sm:$0xff]  ;;  %v1421_v12 = vld [vmem:[#allocation3 + $0x22] sm:$0xff] }
 0x6ab   :  { %2422 = vmatprep.subr.bf16.mxu0 %v2421_v51 }
 0x6ac   :  { %2476 = vmatpush3.bf16.msra.mxu1 %v2473_v24 }
 0x6ad   :  { %2478 = vmatprep.subr.bf16.mxu1 %v3003_v44 }
 0x6ae   :  { %2424 = vmatpush3.bf16.msra.mxu0 %v2421_v51 }
 0x6af   :  { %2426 = vmatprep.subr.bf16.mxu0 %v2425_v58 }
 0x6b2   :  { %2428 = vmatpush3.bf16.msra.mxu0 %v2425_v58 }
 0x6b3   :  { %2430 = vmatprep.subr.bf16.mxu0 %v2429_v40 }
 0x6b5   :  { %2078 = vmatmul.mubr.msk.f32.vlgmr.msra.gmra.mrb[10].mxu0 %vm627_vm4, %v1200_v0 }
 0x6b6   :  { %2080 = vmatprep.mubr.msk.f32.mxu0 %vm627_vm4, %v1201_v3  ;;  %2432 = vmatpush3.bf16.msra.mxu0 %v2429_v40 }
 0x6b7   :  { %2434 = vmatprep.subr.bf16.mxu0 %v2433_v63 }
 0x6b9   :  { %2081 = vmatmul.mubr.msk.f32.gmra.mrb[12].mxu0 %vm627_vm4, %v1202_v5 }
 0x6ba   :  { %2436 = vmatpush3.bf16.msra.mxu0 %v2433_v63  ;;  %2099 = vmatprep.mubr.msk.f32.mxu0 %vm627_vm4, %v1418_v8 }
 0x6bb   :  { %2438 = vmatprep.subr.bf16.mxu0 %v2437_v4 }
 0x6be   :  { %2440 = vmatpush3.bf16.msra.mxu0 %v2437_v4 }
 0x6bf   :  { %2442 = vmatprep.subr.bf16.mxu0 %v2441_v9 }
 0x6c2   :  { %2444 = vmatpush3.bf16.msra.mxu0 %v2441_v9 }
 0x6c5   :  { %2100 = vmatmul.mubr.msk.f32.vlgmr.msra.gmra.mrb[10].mxu0 %vm627_vm4, %v1419_v10 }
 0x6c6   :  { %2102 = vmatprep.mubr.msk.f32.mxu0 %vm627_vm4, %v1420_v11 }
 0x6c9   :  { %2103 = vmatmul.mubr.msk.f32.gmra.mrb[12].mxu0 %vm627_vm4, %v1421_v12 }
 0x798   :  { %v2101_v26 = vpop.f32.mrb[10].mxu0 }
 0x799   :  { %v1540_v27 = vadd.f32 %v2101_v26, %v1817_v25  ;;  %v1509_v28 = vpop.f32.mrb[11].mxu0 }
 0x79a   :  { %v1539_v29 = vadd.f32 %v1817_v25, %v1509_v28 }
 0x79c   :  { %2542 = vtanh.f32 %v1539_v29  ;;  %v2104_v30 = vpop.f32.mrb[12].mxu0 }
 0x79d   :  { %2544 = vtanh.f32 %v1540_v27  ;;  %v1542_v31 = vadd.f32 %v2104_v30, %v1817_v25  ;;  %v1519_v47 = vpop.f32.mrb[13].mxu0 }
 0x79e   :  { %v1541_v32 = vadd.f32 %v1817_v25, %v1519_v47 }
 0x7a0   :  { %2546 = vtanh.f32 %v1541_v32 }
 0x7a1   :  { %2548 = vtanh.f32 %v1542_v31 }
 0x7a6   :  { %v2543_v33 = vpop.eup %2542 }
 0x7a7   :  { %v2545_v34 = vpop.eup %2544  ;;  %2137 = vmatprep.mubr.f32.mxu1 %v2543_v33 }
 0x7a8   :  { %2138 = vmatmul.mubr.f32.vlgmr.msra.gmra.mrb[4].mxu1 %v2545_v34 }
 0x7a9   :  { %2480 = vmatpush3.bf16.msra.mxu1 %v3003_v44 }
 0x7aa   :  { %v2547_v35 = vpop.eup %2546  ;;  %2482 = vmatprep.subr.bf16.mxu1 %v3005_v46 }
 0x7ab   :  { %v2549_v36 = vpop.eup %2548  ;;  %2140 = vmatprep.mubr.f32.mxu1 %v2547_v35 }
 0x7ac   :  { %2141 = vmatmul.mubr.f32.gmra.mrb[6].mxu1 %v2549_v36 }
 0x7ad   :  { %2484 = vmatpush3.bf16.msra.mxu1 %v3005_v46 }
 0x7ae   :  { %2486 = vmatprep.subr.bf16.mxu1 %v3010_v52 }
 0x7b1   :  { %2488 = vmatpush3.bf16.msra.mxu1 %v3010_v52 }
 0x7b2   :  { %2490 = vmatprep.subr.bf16.mxu1 %v3014_v55 }
 0x7b5   :  { %2492 = vmatpush3.bf16.msra.mxu1 %v3014_v55 }
 0x7b6   :  { %2494 = vmatprep.subr.bf16.mxu1 %v2461_v15 }
 0x7b9   :  { %2496 = vmatpush3.bf16.msra.mxu1 %v2461_v15 }
 0x7ba   :  { %2498 = vmatprep.subr.bf16.mxu1 %v2465_v18 }
 0x7bd   :  { %2500 = vmatpush3.bf16.msra.mxu1 %v2465_v18 }
 0x7be   :  { %2502 = vmatprep.subr.bf16.mxu1 %v2469_v22 }
 0x7c1   :  { %2504 = vmatpush3.bf16.msra.mxu1 %v2469_v22 }
 0x7c2   :  { %2506 = vmatprep.subr.bf16.mxu1 %v2473_v24 }
 0x7c5   :  { %2508 = vmatpush3.bf16.msra.mxu1 %v2473_v24 }
 0x87b   :  { %v2139_v44 = vpop.f32.mrb[4].mxu1 }
 0x87c   :  { %v1629_v37 = vpop.f32.mrb[5].mxu1 }
 0x87d   :  { %v1648_v38 = vadd.f32 %v2139_v44, %v1629_v37 }
 0x87f   :  { %v2142_v46 = vpop.f32.mrb[6].mxu1 }
 0x880   :  { %v1639_v48 = vpop.f32.mrb[7].mxu1 }
 0x881   :  { %v1649_v50 = vadd.f32 %v1648_v38, %v1639_v48 }
 0x883   :  { %v1650_v39 = vadd.f32 %v2142_v46, %v1649_v50 }
 0x885   :  { %v1651_v52 = vrot.slane %v1650_v39, 4 }
 0x887   :  { %v1652_v41 = vadd.f32 %v1651_v52, %v1650_v39 }
 0x889   :  { %v1653_v42 = vrot.slane %v1652_v41, 2 }
 0x88b   :  { %v1654_v43 = vadd.f32 %v1653_v42, %v1652_v41 }
 0x88d   :  { %v1655_v55 = vrot.slane %v1654_v43, 1 }
 0x88f   :  { %v1656_v45 = vadd.f32 %v1655_v55, %v1654_v43 }
 0x891   :  { %v1657_v49 = vmul.f32 0.001953125, %v1656_v45 }
 0x893   :  { %v1658_v51 = vsub.f32 %v2543_v33, %v1657_v49  ;;  %v1659_v53 = vsub.f32 %v2545_v34, %v1657_v49  ;;  %v1660_v54 = vsub.f32 %v2547_v35, %v1657_v49  ;;  %v1661_v58 = vsub.f32 %v2549_v36, %v1657_v49 }
 0x895   :  { %v1662_v56 = vmul.f32 %v1658_v51, %v1658_v51  ;;  %v1663_v57 = vmul.f32 %v1659_v53, %v1659_v53  ;;  %v1664_v59 = vmul.f32 %v1660_v54, %v1660_v54  ;;  %v1665_v60 = vmul.f32 %v1661_v58, %v1661_v58 }
 0x897   :  { %2175 = vmatprep.mubr.f32.mxu1 %v1662_v56 }
 0x898   :  { %2176 = vmatmul.mubr.f32.vlgmr.msra.gmra.mrb[8].mxu1 %v1663_v57 }
 0x899   :  { %2178 = vmatprep.mubr.f32.mxu1 %v1664_v59 }
 0x89c   :  { %2179 = vmatmul.mubr.f32.gmra.mrb[10].mxu1 %v1665_v60 }
 0x96b   :  { %v2177_v40 = vpop.f32.mrb[8].mxu1 }
 0x96c   :  { %v1732_v61 = vpop.f32.mrb[9].mxu1 }
 0x96d   :  { %v1751_v62 = vadd.f32 %v2177_v40, %v1732_v61 }
 0x96f   :  { %v2180_v63 = vpop.f32.mrb[10].mxu1 }
 0x970   :  { %v1742_v0 = vpop.f32.mrb[11].mxu1 }
 0x971   :  { %v1752_v1 = vadd.f32 %v1751_v62, %v1742_v0 }
 0x973   :  { %v1753_v2 = vadd.f32 %v2180_v63, %v1752_v1 }
 0x975   :  { %v1754_v3 = vrot.slane %v1753_v2, 4 }
 0x977   :  { %v1755_v4 = vadd.f32 %v1754_v3, %v1753_v2 }
 0x979   :  { %v1756_v5 = vrot.slane %v1755_v4, 2 }
 0x97b   :  { %v1757_v6 = vadd.f32 %v1756_v5, %v1755_v4 }
 0x97d   :  { %v1758_v7 = vrot.slane %v1757_v6, 1 }
 0x97f   :  { %v1759_v8 = vadd.f32 %v1758_v7, %v1757_v6 }
 0x981   :  { %v1760_v9 = vmul.f32 0.001953125, %v1759_v8 }
 0x983   :  { %v1761_v10 = vadd.f32 1e-05, %v1760_v9 }
 0x985   :  { %2550 = vrsqrt.f32 %v1761_v10 }
 0x98f   :  { %v2551_v11 = vpop.eup %2550 }
 0x990   :  { %v1763_v12 = vmul.f32 %v2551_v11, %v1658_v51  ;;  %v1764_v13 = vmul.f32 %v2551_v11, %v1659_v53  ;;  %v1765_v14 = vmul.f32 %v2551_v11, %v1660_v54  ;;  %v1766_v15 = vmul.f32 %v2551_v11, %v1661_v58 }
 0x992   :  { %1767 = vst [vmem:[#allocation16] sm:$0xff] %v1763_v12  ;;  %1768 = vst [vmem:[#allocation16 + $0x8] sm:$0xff] %v1764_v13 }
 0x993   :  { %1769 = vst [vmem:[#allocation16 + $0x10] sm:$0xff] %v1765_v14  ;;  %1770 = vst [vmem:[#allocation16 + $0x18] sm:$0xff] %v1766_v15 }
 0x994   :  { %2717 = shalt.err (!%p2714_p4)
}
 0x995   :  { %s2718_s0 = scalar_lea.hbm %s3108_s14, 512 }
 0x996   :  { %p2719_p5 = scmp.ne.s32.totalorder %s3108_s14, %s2718_s0  ;;  %p2722_p6 = scmp.lt.u32.totalorder %s2718_s0, %s3108_s14 }
 0x998   :  { %p2724_p7 = pnand %p2722_p6, %p2719_p5 }
 0x99a   :  { %2727 = shalt.err (!%p2724_p7)
}
 0x99b   :  { %1782 = dma.vmem_to_hbm [thread:$0]  %s1777_s21, 512, %s3108_s14, [#allocation6], %s2742_s1, %s2742_s1, %s2743_s30  }
 0x99c   :  { %2736 = dma.done.wait [#allocation6], 512  }
 0x99d   :  { %2737 = vsyncadd [#allocation6], 4294966784 }
 0x99e   :  { %1786 = vsyncpa [#allocation5], 1 }
 0x99f   :  { %1787 = vsyncpa [#allocation8], 1 }
 0x9a0   :  { %1788 = vsyncpa [#allocation11], 1 }
 0x9a1   :  { %1789 = vsyncpa [#allocation14], 1 }
 0x9a2   :  { %1790 = vsyncpa [#allocation6], 1 }

</bundles_post_ra>
